<compile_context>
chip_gen: v5e
topology: v5e:2x2
jax: 0.10.0
libtpu: 0.0.40
codegen_flags: <defaults>
</compile_context>

<pallas_src>
import functools
import math

import jax
import jax.numpy as jnp
from jax.experimental import pallas as pl
from jax.experimental.pallas import tpu as pltpu

BN_EPS = 1e-5
LANE = 128
SUBLANE = 8
VMEM_LIMIT = 32 * 1024 * 1024  # safe on v5e/v6e (128 MiB) and v7x (64 MiB) VMEM


def _round_up(v, m):
    return (v + m - 1) // m * m


# ------------------------------ Pallas kernels ------------------------------

def _first_conv_kernel(x_ref, w_ref, b_ref, o_ref, *, Ho, Wo, Wo_pad):
    """3x3 stride-2 conv (Cin=3) + folded-BN + ReLU6; one image per grid step."""
    cout = w_ref.shape[-1]
    m = Ho * Wo_pad
    acc = jnp.zeros((m, cout), jnp.float32)
    for kh in range(3):
        for kw in range(3):
            # Only the strided taps that contribute to real outputs are loaded.
            tap = x_ref[pl.ds(kh, Ho, stride=2), pl.ds(kw, Wo_pad, stride=2), :]
            lhs = tap.reshape(m, 3).astype(jnp.bfloat16)  # clean merge: Wo_pad % 8 == 0
            acc = acc + jnp.dot(lhs, w_ref[kh * 3 + kw],
                                preferred_element_type=jnp.float32)
    y = jnp.clip(acc + b_ref[...], 0.0, 6.0)
    o_ref[...] = y.reshape(Ho, Wo_pad, cout)[:, :Wo, :].astype(o_ref.dtype)


def _dsconv_kernel(x_ref, dww_ref, dwb_ref, pww_ref, pwb_ref, o_ref,
                   *, Ho, Wo, Wo_pad, stride):
    """Fused depthwise 3x3 (+BN+ReLU6) and pointwise 1x1 (+BN+ReLU6) block.

    x_ref : (Hp, Wp, Cin)  spatially zero-padded input (one image)
    dww   : (9, Cin)  depthwise weights with BN scale folded in (f32, VPU)
    pww   : (Cin, Cout) pointwise weights with BN scale folded in (bf16, MXU)
    """
    cin = dww_ref.shape[1]
    cout = pww_ref.shape[1]

    acc = jnp.zeros((Ho, Wo_pad, cin), jnp.float32)
    if stride == 1:
        x = x_ref[...].astype(jnp.float32)          # (Ho+2, Wp, Cin), Wp % 8 == 0
        wp = x.shape[1]
        for kw in range(3):
            # rotate along W on the XLU so every tap slice starts at sublane 0
            xs = x if kw == 0 else pltpu.roll(x, shift=wp - kw, axis=1)
            for kh in range(3):
                tap = xs[kh:kh + Ho, 0:Wo_pad, :]
                acc = acc + tap * dww_ref[kh * 3 + kw].reshape(1, 1, cin)
    else:  # stride == 2: load only the strided taps that are actually needed
        for kh in range(3):
            for kw in range(3):
                tap = x_ref[pl.ds(kh, Ho, stride=2),
                            pl.ds(kw, Wo_pad, stride=2), :].astype(jnp.float32)
                acc = acc + tap * dww_ref[kh * 3 + kw].reshape(1, 1, cin)

    # depthwise BN (scale already folded into dww) + ReLU6
    y = jnp.clip(acc + dwb_ref[...].reshape(1, 1, cin), 0.0, 6.0)

    # pointwise 1x1 conv as a single MXU matmul (bf16 inputs, f32 accumulate);
    # BN scale folded into pww, epilogue is just +shift and ReLU6.
    y2 = jnp.dot(y.reshape(Ho * Wo_pad, cin).astype(jnp.bfloat16), pww_ref[...],
                 preferred_element_type=jnp.float32)
    y2 = jnp.clip(y2 + pwb_ref[...], 0.0, 6.0)
    o_ref[...] = y2.reshape(Ho, Wo_pad, cout)[:, :Wo, :].astype(o_ref.dtype)


def _head_kernel(x_ref, w_ref, b_ref, o_ref):
    """Global average pool (AdaptiveAvgPool2d(1,1) + view) fused with classifier."""
    x = x_ref[...].astype(jnp.float32)
    inv = 1.0 / (x_ref.shape[1] * x_ref.shape[2])
    pooled = jnp.sum(x, axis=(1, 2)) * inv                        # (N, C)
    y = jnp.dot(pooled.astype(jnp.bfloat16), w_ref[...],
                preferred_element_type=jnp.float32)
    o_ref[...] = y + b_ref[...]                                   # lane-dense (N, 128)


# ------------------------------ layer wrappers ------------------------------

def first_conv(x, w27, shift, out_dtype):
    n, h, w, cin = x.shape
    ho, wo = h // 2, w // 2
    wo_pad = _round_up(wo, SUBLANE)
    hp = 2 * ho + 1
    wp = 2 * wo_pad + 2
    x_pad = jnp.pad(x, ((0, 0), (1, hp - 1 - h), (1, wp - 1 - w), (0, 0)))
    cout = w27.shape[-1]
    kern = functools.partial(_first_conv_kernel, Ho=ho, Wo=wo, Wo_pad=wo_pad)
    return pl.pallas_call(
        kern,
        out_shape=jax.ShapeDtypeStruct((n, ho, wo, cout), out_dtype),
        grid=(n,),
        in_specs=[
            pl.BlockSpec((None, hp, wp, cin), lambda i: (i, 0, 0, 0)),
            pl.BlockSpec((9, 3, cout), lambda i: (0, 0, 0)),
            pl.BlockSpec((1, cout), lambda i: (0, 0)),
        ],
        out_specs=pl.BlockSpec((None, ho, wo, cout), lambda i: (i, 0, 0, 0)),
        compiler_params=pltpu.CompilerParams(
            dimension_semantics=("parallel",),
            vmem_limit_bytes=VMEM_LIMIT),
    )(x_pad, w27, shift)


def dsconv_block(x, dw_w, dw_b, pw_w, pw_b, stride, out_dtype):
    n, h, w, cin = x.shape
    cout = pw_w.shape[1]
    ho, wo = h // stride, w // stride
    wo_pad = _round_up(wo, SUBLANE)
    if stride == 1:
        hp = ho + 2
        wp = _round_up(wo_pad + 2, SUBLANE)   # sublane-aligned width for pltpu.roll
    else:
        hp = 2 * ho + 1
        wp = 2 * wo_pad + 2
    x_pad = jnp.pad(x, ((0, 0), (1, hp - 1 - h), (1, wp - 1 - w), (0, 0)))
    kern = functools.partial(_dsconv_kernel, Ho=ho, Wo=wo, Wo_pad=wo_pad,
                             stride=stride)
    return pl.pallas_call(
        kern,
        out_shape=jax.ShapeDtypeStruct((n, ho, wo, cout), out_dtype),
        grid=(n,),
        in_specs=[
            pl.BlockSpec((None, hp, wp, cin), lambda i: (i, 0, 0, 0)),
            pl.BlockSpec((9, cin), lambda i: (0, 0)),
            pl.BlockSpec((1, cin), lambda i: (0, 0)),
            pl.BlockSpec((cin, cout), lambda i: (0, 0)),
            pl.BlockSpec((1, cout), lambda i: (0, 0)),
        ],
        out_specs=pl.BlockSpec((None, ho, wo, cout), lambda i: (i, 0, 0, 0)),
        compiler_params=pltpu.CompilerParams(
            dimension_semantics=("parallel",),
            vmem_limit_bytes=VMEM_LIMIT),
    )(x_pad, dw_w, dw_b, pw_w, pw_b)


def head(x, fc_w_pad, fc_b_pad, num_classes):
    n = x.shape[0]
    npad = fc_w_pad.shape[1]
    out = pl.pallas_call(
        _head_kernel,
        out_shape=jax.ShapeDtypeStruct((n, npad), jnp.float32),
        in_specs=[pl.BlockSpec(memory_space=pltpu.MemorySpace.VMEM)] * 3,
        out_specs=pl.BlockSpec(memory_space=pltpu.MemorySpace.VMEM),
    )(x, fc_w_pad, fc_b_pad)
    return out[:, :num_classes]


# ------------------------------ model definition -----------------------------

def make_divisible(v, divisor=8, min_value=8):
    new_v = max(min_value, int(v + divisor / 2) // divisor * divisor)
    if new_v < 0.9 * v:
        new_v += divisor
    return new_v


BLOCK_SETTING = [[64, 1, 1], [128, 2, 2], [256, 2, 2], [512, 6, 2], [1024, 2, 2]]
INIT_CHANNEL = 32
NUM_CLASSES = 74


def _bn_scale_shift(c):
    # inference-mode BN with gamma=1, beta=0, running_mean=0, running_var=1
    scale = jnp.full((c,), 1.0 / math.sqrt(1.0 + BN_EPS), jnp.float32)
    shift = jnp.zeros((c,), jnp.float32)
    return scale, shift


def init_params(key):
    params = {}
    channels = make_divisible(INIT_CHANNEL)

    # first conv: 3 -> channels, 3x3 stride 2; stored as (9, 3, Cout), BN folded
    k = jax.random.fold_in(key, 0)
    std = math.sqrt(2.0 / (3 * 3 * channels))
    w = std * jax.random.normal(k, (9, 3, channels), jnp.float32)
    scale, shift = _bn_scale_shift(channels)
    params["first_w"] = (w * scale[None, None, :]).astype(jnp.bfloat16)
    params["first_b"] = shift.reshape(1, channels)

    blocks = []
    idx = 1
    for c, n, s in BLOCK_SETTING:
        outp = make_divisible(c)
        for i in range(n):
            stride = s if i == 0 else 1
            kd = jax.random.fold_in(key, idx); idx += 1
            kp = jax.random.fold_in(key, idx); idx += 1
            dw_std = math.sqrt(2.0 / (3 * 3 * channels))
            pw_std = math.sqrt(2.0 / (1 * 1 * outp))
            dw_w = dw_std * jax.random.normal(kd, (9, channels), jnp.float32)
            pw_w = pw_std * jax.random.normal(kp, (channels, outp), jnp.float32)
            dsc, dsh = _bn_scale_shift(channels)
            psc, psh = _bn_scale_shift(outp)
            blocks.append(dict(
                stride=stride,
                dw_w=dw_w * dsc[None, :],                         # BN scale folded (f32, VPU)
                dw_b=dsh.reshape(1, channels),
                pw_w=(pw_w * psc[None, :]).astype(jnp.bfloat16),  # BN scale folded (bf16, MXU)
                pw_b=psh.reshape(1, outp),
            ))
            channels = outp
    params["blocks"] = blocks

    # classifier: Linear(1024 -> num_classes), weight ~ N(0, 0.01), bias = 0,
    # padded to a lane-dense 128 output columns (sliced back to 74 in glue).
    kl = jax.random.fold_in(key, idx)
    fc_w = 0.01 * jax.random.normal(kl, (channels, NUM_CLASSES), jnp.float32)
    npad = _round_up(NUM_CLASSES, LANE)
    fc_w_pad = jnp.zeros((channels, npad), jnp.float32).at[:, :NUM_CLASSES].set(fc_w)
    params["fc_w"] = fc_w_pad.astype(jnp.bfloat16)
    params["fc_b"] = jnp.zeros((1, npad), jnp.float32)
    return params


def forward(params, x_nchw):
    # PyTorch reference takes NCHW; kernels run NHWC (channels on the 128-lane axis).
    x = jnp.transpose(x_nchw, (0, 2, 3, 1)).astype(jnp.float32)

    blocks = params["blocks"]

    # Activations travel as bf16 (half the HBM traffic) except when the consumer
    # is a stride-2 block, whose strided sublane loads stay on f32 data.
    def act_dtype(next_stride):
        return jnp.float32 if next_stride == 2 else jnp.bfloat16

    x = first_conv(x, params["first_w"], params["first_b"],
                   out_dtype=act_dtype(blocks[0]["stride"]))
    for i, blk in enumerate(blocks):
        nxt = blocks[i + 1]["stride"] if i + 1 < len(blocks) else 1
        x = dsconv_block(x, blk["dw_w"], blk["dw_b"], blk["pw_w"], blk["pw_b"],
                         blk["stride"], out_dtype=act_dtype(nxt))

    return head(x, params["fc_w"], params["fc_b"], NUM_CLASSES)


if __name__ == "__main__":
    key = jax.random.PRNGKey(0)
    pkey, xkey = jax.random.split(key)
    params = init_params(pkey)

    # input_size must be divisible by 32; use the smallest (32) with batch=2.
    x = jax.random.normal(xkey, (2, 3, 32, 32), jnp.float32)

    logits = forward(params, x)
    logits = jax.block_until_ready(logits)
    assert logits.shape == (2, NUM_CLASSES), logits.shape
    assert bool(jnp.all(jnp.isfinite(logits)))
    print("KERNEL_OK")
</pallas_src>

<mosaic_0001>
module attributes {stable_mosaic.version = 11 : i64} {
  func.func @_first_conv_kernel(%arg0: i32, %arg1: memref<1x33x34x3xf32, #tpu.memory_space<vmem>>, %arg2: memref<9x3x32xbf16, #tpu.memory_space<vmem>>, %arg3: memref<1x32xf32, #tpu.memory_space<vmem>>, %arg4: memref<1x16x16x32xbf16, #tpu.memory_space<vmem>>) attributes {dimension_semantics = [#tpu.dimension_semantics<parallel>], iteration_bounds = array<i64: 2>, scalar_prefetch = 0 : i64, scratch_operands = 0 : i64, tpu.core_type = #tpu.core_type<tc>, window_params = [{transform_indices = @transform_0, window_bounds = array<i64: 1, 33, 34, 3>}, {pipeline_mode = #tpu.pipeline_mode<synchronous>, transform_indices = @transform_1, window_bounds = array<i64: 9, 3, 32>}, {pipeline_mode = #tpu.pipeline_mode<synchronous>, transform_indices = @transform_2, window_bounds = array<i64: 1, 32>}, {transform_indices = @transform_3, window_bounds = array<i64: 1, 16, 16, 32>}]} {
    %cst = arith.constant 0.000000e+00 : f32
    %0 = vector.broadcast %cst : f32 to vector<256x32xf32>
    %c0 = arith.constant 0 : index
    %c0_0 = arith.constant 0 : index
    %c0_1 = arith.constant 0 : index
    %c0_2 = arith.constant 0 : index
    %1 = tpu.strided_load %arg1[%c0, %c0_0, %c0_1, %c0_2] {strides = array<i32: 1, 2, 2, 1>} : memref<1x33x34x3xf32, #tpu.memory_space<vmem>>, vector<1x16x16x3xf32>
    %2 = vector.shape_cast %1 : vector<1x16x16x3xf32> to vector<16x16x3xf32>
    %3 = vector.shape_cast %2 : vector<16x16x3xf32> to vector<256x3xf32>
    %4 = arith.truncf %3 : vector<256x3xf32> to vector<256x3xbf16>
    %c0_3 = arith.constant 0 : index
    %c0_4 = arith.constant 0 : index
    %c0_5 = arith.constant 0 : index
    %5 = vector.load %arg2[%c0_3, %c0_4, %c0_5] : memref<9x3x32xbf16, #tpu.memory_space<vmem>>, vector<1x3x32xbf16>
    %6 = vector.shape_cast %5 : vector<1x3x32xbf16> to vector<3x32xbf16>
    %cst_6 = arith.constant dense<0.000000e+00> : vector<256x32xf32>
    %7 = tpu.matmul %4, %6, %cst_6 {dimension_numbers = #tpu.dot_dimension_numbers<[1], [0], [0], [1], [0, 0, 1, 1], [], []>} : vector<256x3xbf16>, vector<3x32xbf16>, vector<256x32xf32> -> vector<256x32xf32>
    %8 = arith.addf %0, %7 : vector<256x32xf32>
    %c0_7 = arith.constant 0 : index
    %c0_8 = arith.constant 0 : index
    %c1 = arith.constant 1 : index
    %c0_9 = arith.constant 0 : index
    %9 = tpu.strided_load %arg1[%c0_7, %c0_8, %c1, %c0_9] {strides = array<i32: 1, 2, 2, 1>} : memref<1x33x34x3xf32, #tpu.memory_space<vmem>>, vector<1x16x16x3xf32>
    %10 = vector.shape_cast %9 : vector<1x16x16x3xf32> to vector<16x16x3xf32>
    %11 = vector.shape_cast %10 : vector<16x16x3xf32> to vector<256x3xf32>
    %12 = arith.truncf %11 : vector<256x3xf32> to vector<256x3xbf16>
    %c1_10 = arith.constant 1 : index
    %c0_11 = arith.constant 0 : index
    %c0_12 = arith.constant 0 : index
    %13 = vector.load %arg2[%c1_10, %c0_11, %c0_12] : memref<9x3x32xbf16, #tpu.memory_space<vmem>>, vector<1x3x32xbf16>
    %14 = vector.shape_cast %13 : vector<1x3x32xbf16> to vector<3x32xbf16>
    %cst_13 = arith.constant dense<0.000000e+00> : vector<256x32xf32>
    %15 = tpu.matmul %12, %14, %cst_13 {dimension_numbers = #tpu.dot_dimension_numbers<[1], [0], [0], [1], [0, 0, 1, 1], [], []>} : vector<256x3xbf16>, vector<3x32xbf16>, vector<256x32xf32> -> vector<256x32xf32>
    %16 = arith.addf %8, %15 : vector<256x32xf32>
    %c0_14 = arith.constant 0 : index
    %c0_15 = arith.constant 0 : index
    %c2 = arith.constant 2 : index
    %c0_16 = arith.constant 0 : index
    %17 = tpu.strided_load %arg1[%c0_14, %c0_15, %c2, %c0_16] {strides = array<i32: 1, 2, 2, 1>} : memref<1x33x34x3xf32, #tpu.memory_space<vmem>>, vector<1x16x16x3xf32>
    %18 = vector.shape_cast %17 : vector<1x16x16x3xf32> to vector<16x16x3xf32>
    %19 = vector.shape_cast %18 : vector<16x16x3xf32> to vector<256x3xf32>
    %20 = arith.truncf %19 : vector<256x3xf32> to vector<256x3xbf16>
    %c2_17 = arith.constant 2 : index
    %c0_18 = arith.constant 0 : index
    %c0_19 = arith.constant 0 : index
    %21 = vector.load %arg2[%c2_17, %c0_18, %c0_19] : memref<9x3x32xbf16, #tpu.memory_space<vmem>>, vector<1x3x32xbf16>
    %22 = vector.shape_cast %21 : vector<1x3x32xbf16> to vector<3x32xbf16>
    %cst_20 = arith.constant dense<0.000000e+00> : vector<256x32xf32>
    %23 = tpu.matmul %20, %22, %cst_20 {dimension_numbers = #tpu.dot_dimension_numbers<[1], [0], [0], [1], [0, 0, 1, 1], [], []>} : vector<256x3xbf16>, vector<3x32xbf16>, vector<256x32xf32> -> vector<256x32xf32>
    %24 = arith.addf %16, %23 : vector<256x32xf32>
    %c0_21 = arith.constant 0 : index
    %c1_22 = arith.constant 1 : index
    %c0_23 = arith.constant 0 : index
    %c0_24 = arith.constant 0 : index
    %25 = tpu.strided_load %arg1[%c0_21, %c1_22, %c0_23, %c0_24] {strides = array<i32: 1, 2, 2, 1>} : memref<1x33x34x3xf32, #tpu.memory_space<vmem>>, vector<1x16x16x3xf32>
    %26 = vector.shape_cast %25 : vector<1x16x16x3xf32> to vector<16x16x3xf32>
    %27 = vector.shape_cast %26 : vector<16x16x3xf32> to vector<256x3xf32>
    %28 = arith.truncf %27 : vector<256x3xf32> to vector<256x3xbf16>
    %c3 = arith.constant 3 : index
    %c0_25 = arith.constant 0 : index
    %c0_26 = arith.constant 0 : index
    %29 = vector.load %arg2[%c3, %c0_25, %c0_26] : memref<9x3x32xbf16, #tpu.memory_space<vmem>>, vector<1x3x32xbf16>
    %30 = vector.shape_cast %29 : vector<1x3x32xbf16> to vector<3x32xbf16>
    %cst_27 = arith.constant dense<0.000000e+00> : vector<256x32xf32>
    %31 = tpu.matmul %28, %30, %cst_27 {dimension_numbers = #tpu.dot_dimension_numbers<[1], [0], [0], [1], [0, 0, 1, 1], [], []>} : vector<256x3xbf16>, vector<3x32xbf16>, vector<256x32xf32> -> vector<256x32xf32>
    %32 = arith.addf %24, %31 : vector<256x32xf32>
    %c0_28 = arith.constant 0 : index
    %c1_29 = arith.constant 1 : index
    %c1_30 = arith.constant 1 : index
    %c0_31 = arith.constant 0 : index
    %33 = tpu.strided_load %arg1[%c0_28, %c1_29, %c1_30, %c0_31] {strides = array<i32: 1, 2, 2, 1>} : memref<1x33x34x3xf32, #tpu.memory_space<vmem>>, vector<1x16x16x3xf32>
    %34 = vector.shape_cast %33 : vector<1x16x16x3xf32> to vector<16x16x3xf32>
    %35 = vector.shape_cast %34 : vector<16x16x3xf32> to vector<256x3xf32>
    %36 = arith.truncf %35 : vector<256x3xf32> to vector<256x3xbf16>
    %c4 = arith.constant 4 : index
    %c0_32 = arith.constant 0 : index
    %c0_33 = arith.constant 0 : index
    %37 = vector.load %arg2[%c4, %c0_32, %c0_33] : memref<9x3x32xbf16, #tpu.memory_space<vmem>>, vector<1x3x32xbf16>
    %38 = vector.shape_cast %37 : vector<1x3x32xbf16> to vector<3x32xbf16>
    %cst_34 = arith.constant dense<0.000000e+00> : vector<256x32xf32>
    %39 = tpu.matmul %36, %38, %cst_34 {dimension_numbers = #tpu.dot_dimension_numbers<[1], [0], [0], [1], [0, 0, 1, 1], [], []>} : vector<256x3xbf16>, vector<3x32xbf16>, vector<256x32xf32> -> vector<256x32xf32>
    %40 = arith.addf %32, %39 : vector<256x32xf32>
    %c0_35 = arith.constant 0 : index
    %c1_36 = arith.constant 1 : index
    %c2_37 = arith.constant 2 : index
    %c0_38 = arith.constant 0 : index
    %41 = tpu.strided_load %arg1[%c0_35, %c1_36, %c2_37, %c0_38] {strides = array<i32: 1, 2, 2, 1>} : memref<1x33x34x3xf32, #tpu.memory_space<vmem>>, vector<1x16x16x3xf32>
    %42 = vector.shape_cast %41 : vector<1x16x16x3xf32> to vector<16x16x3xf32>
    %43 = vector.shape_cast %42 : vector<16x16x3xf32> to vector<256x3xf32>
    %44 = arith.truncf %43 : vector<256x3xf32> to vector<256x3xbf16>
    %c5 = arith.constant 5 : index
    %c0_39 = arith.constant 0 : index
    %c0_40 = arith.constant 0 : index
    %45 = vector.load %arg2[%c5, %c0_39, %c0_40] : memref<9x3x32xbf16, #tpu.memory_space<vmem>>, vector<1x3x32xbf16>
    %46 = vector.shape_cast %45 : vector<1x3x32xbf16> to vector<3x32xbf16>
    %cst_41 = arith.constant dense<0.000000e+00> : vector<256x32xf32>
    %47 = tpu.matmul %44, %46, %cst_41 {dimension_numbers = #tpu.dot_dimension_numbers<[1], [0], [0], [1], [0, 0, 1, 1], [], []>} : vector<256x3xbf16>, vector<3x32xbf16>, vector<256x32xf32> -> vector<256x32xf32>
    %48 = arith.addf %40, %47 : vector<256x32xf32>
    %c0_42 = arith.constant 0 : index
    %c2_43 = arith.constant 2 : index
    %c0_44 = arith.constant 0 : index
    %c0_45 = arith.constant 0 : index
    %49 = tpu.strided_load %arg1[%c0_42, %c2_43, %c0_44, %c0_45] {strides = array<i32: 1, 2, 2, 1>} : memref<1x33x34x3xf32, #tpu.memory_space<vmem>>, vector<1x16x16x3xf32>
    %50 = vector.shape_cast %49 : vector<1x16x16x3xf32> to vector<16x16x3xf32>
    %51 = vector.shape_cast %50 : vector<16x16x3xf32> to vector<256x3xf32>
    %52 = arith.truncf %51 : vector<256x3xf32> to vector<256x3xbf16>
    %c6 = arith.constant 6 : index
    %c0_46 = arith.constant 0 : index
    %c0_47 = arith.constant 0 : index
    %53 = vector.load %arg2[%c6, %c0_46, %c0_47] : memref<9x3x32xbf16, #tpu.memory_space<vmem>>, vector<1x3x32xbf16>
    %54 = vector.shape_cast %53 : vector<1x3x32xbf16> to vector<3x32xbf16>
    %cst_48 = arith.constant dense<0.000000e+00> : vector<256x32xf32>
    %55 = tpu.matmul %52, %54, %cst_48 {dimension_numbers = #tpu.dot_dimension_numbers<[1], [0], [0], [1], [0, 0, 1, 1], [], []>} : vector<256x3xbf16>, vector<3x32xbf16>, vector<256x32xf32> -> vector<256x32xf32>
    %56 = arith.addf %48, %55 : vector<256x32xf32>
    %c0_49 = arith.constant 0 : index
    %c2_50 = arith.constant 2 : index
    %c1_51 = arith.constant 1 : index
    %c0_52 = arith.constant 0 : index
    %57 = tpu.strided_load %arg1[%c0_49, %c2_50, %c1_51, %c0_52] {strides = array<i32: 1, 2, 2, 1>} : memref<1x33x34x3xf32, #tpu.memory_space<vmem>>, vector<1x16x16x3xf32>
    %58 = vector.shape_cast %57 : vector<1x16x16x3xf32> to vector<16x16x3xf32>
    %59 = vector.shape_cast %58 : vector<16x16x3xf32> to vector<256x3xf32>
    %60 = arith.truncf %59 : vector<256x3xf32> to vector<256x3xbf16>
    %c7 = arith.constant 7 : index
    %c0_53 = arith.constant 0 : index
    %c0_54 = arith.constant 0 : index
    %61 = vector.load %arg2[%c7, %c0_53, %c0_54] : memref<9x3x32xbf16, #tpu.memory_space<vmem>>, vector<1x3x32xbf16>
    %62 = vector.shape_cast %61 : vector<1x3x32xbf16> to vector<3x32xbf16>
    %cst_55 = arith.constant dense<0.000000e+00> : vector<256x32xf32>
    %63 = tpu.matmul %60, %62, %cst_55 {dimension_numbers = #tpu.dot_dimension_numbers<[1], [0], [0], [1], [0, 0, 1, 1], [], []>} : vector<256x3xbf16>, vector<3x32xbf16>, vector<256x32xf32> -> vector<256x32xf32>
    %64 = arith.addf %56, %63 : vector<256x32xf32>
    %c0_56 = arith.constant 0 : index
    %c2_57 = arith.constant 2 : index
    %c2_58 = arith.constant 2 : index
    %c0_59 = arith.constant 0 : index
    %65 = tpu.strided_load %arg1[%c0_56, %c2_57, %c2_58, %c0_59] {strides = array<i32: 1, 2, 2, 1>} : memref<1x33x34x3xf32, #tpu.memory_space<vmem>>, vector<1x16x16x3xf32>
    %66 = vector.shape_cast %65 : vector<1x16x16x3xf32> to vector<16x16x3xf32>
    %67 = vector.shape_cast %66 : vector<16x16x3xf32> to vector<256x3xf32>
    %68 = arith.truncf %67 : vector<256x3xf32> to vector<256x3xbf16>
    %c8 = arith.constant 8 : index
    %c0_60 = arith.constant 0 : index
    %c0_61 = arith.constant 0 : index
    %69 = vector.load %arg2[%c8, %c0_60, %c0_61] : memref<9x3x32xbf16, #tpu.memory_space<vmem>>, vector<1x3x32xbf16>
    %70 = vector.shape_cast %69 : vector<1x3x32xbf16> to vector<3x32xbf16>
    %cst_62 = arith.constant dense<0.000000e+00> : vector<256x32xf32>
    %71 = tpu.matmul %68, %70, %cst_62 {dimension_numbers = #tpu.dot_dimension_numbers<[1], [0], [0], [1], [0, 0, 1, 1], [], []>} : vector<256x3xbf16>, vector<3x32xbf16>, vector<256x32xf32> -> vector<256x32xf32>
    %72 = arith.addf %64, %71 : vector<256x32xf32>
    %c0_63 = arith.constant 0 : index
    %c0_64 = arith.constant 0 : index
    %73 = vector.load %arg3[%c0_63, %c0_64] : memref<1x32xf32, #tpu.memory_space<vmem>>, vector<1x32xf32>
    %74 = vector.broadcast %73 : vector<1x32xf32> to vector<256x32xf32>
    %75 = arith.addf %72, %74 : vector<256x32xf32>
    %cst_65 = arith.constant 0.000000e+00 : f32
    %cst_66 = arith.constant 6.000000e+00 : f32
    %76 = vector.broadcast %cst_65 : f32 to vector<256x32xf32>
    %77 = arith.maximumf %76, %75 : vector<256x32xf32>
    %78 = vector.broadcast %cst_66 : f32 to vector<256x32xf32>
    %79 = arith.minimumf %78, %77 : vector<256x32xf32>
    %80 = vector.shape_cast %79 : vector<256x32xf32> to vector<16x16x32xf32>
    %81 = arith.truncf %80 : vector<16x16x32xf32> to vector<16x16x32xbf16>
    %c0_67 = arith.constant 0 : index
    %c0_68 = arith.constant 0 : index
    %c0_69 = arith.constant 0 : index
    %c0_70 = arith.constant 0 : index
    %82 = vector.load %arg4[%c0_67, %c0_68, %c0_69, %c0_70] : memref<1x16x16x32xbf16, #tpu.memory_space<vmem>>, vector<1x16x16x32xbf16>
    %83 = vector.shape_cast %82 : vector<1x16x16x32xbf16> to vector<16x16x32xbf16>
    %84 = vector.shape_cast %81 : vector<16x16x32xbf16> to vector<1x16x16x32xbf16>
    tpu.vector_store %arg4[%c0_67, %c0_68, %c0_69, %c0_70], %84 {strides = array<i32>} : memref<1x16x16x32xbf16, #tpu.memory_space<vmem>>, vector<1x16x16x32xbf16>,
    return
  }
  func.func @transform_0(%arg0: i32) -> (i32, i32, i32, i32) {
    %c0_i32 = arith.constant 0 : i32
    %c0_i32_0 = arith.constant 0 : i32
    %c0_i32_1 = arith.constant 0 : i32
    %c0_i32_2 = arith.constant 0 : i32
    return %arg0, %c0_i32, %c0_i32_0, %c0_i32_1 : i32, i32, i32, i32
  }
  func.func @transform_1(%arg0: i32) -> (i32, i32, i32) {
    %c0_i32 = arith.constant 0 : i32
    %c0_i32_0 = arith.constant 0 : i32
    %c0_i32_1 = arith.constant 0 : i32
    %c0_i32_2 = arith.constant 0 : i32
    return %c0_i32, %c0_i32_0, %c0_i32_1 : i32, i32, i32
  }
  func.func @transform_2(%arg0: i32) -> (i32, i32) {
    %c0_i32 = arith.constant 0 : i32
    %c0_i32_0 = arith.constant 0 : i32
    %c0_i32_1 = arith.constant 0 : i32
    return %c0_i32, %c0_i32_0 : i32, i32
  }
  func.func @transform_3(%arg0: i32) -> (i32, i32, i32, i32) {
    %c0_i32 = arith.constant 0 : i32
    %c0_i32_0 = arith.constant 0 : i32
    %c0_i32_1 = arith.constant 0 : i32
    %c0_i32_2 = arith.constant 0 : i32
    return %arg0, %c0_i32, %c0_i32_0, %c0_i32_1 : i32, i32, i32, i32
  }
}

</mosaic_0001>

<bundles_post_ra>
// kernel: tpu_custom_call.1
= control target key start
LH: loop header
LB: loop body
LE: loop exit
PB: predicated region body
PF: predicated region fallthrough
CT: control target
= control target key end

     0   :  { %8 = vsyncpa [#allocation3], 0  ;;  %s4273_s0 = inlined_call_operand.vmem [shape: f32[2,33,34,3], index: 0, kind: input, shape index: {}]   ;;  %s4274_s1 = inlined_call_operand.vmem [shape: bf16[9,3,32], index: 1, kind: input, shape index: {}]   ;;  %s4275_s2 = inlined_call_operand.vmem [shape: f32[1,32], index: 2, kind: input, shape index: {}]   ;;  %s4276_s3 = inlined_call_operand.hbm [shape: bf16[2,16,16,32], index: 3, kind: output, shape index: {}]  }
   0x1   :  { %10 = vsyncpa [#allocation3 + $0x1], 0  ;;  %s3414_s12 = smov 0   ;;  %s3416_s13 = smov 0  }
   0x2   :  { %s3418_s14 = smov 0   ;;  %s3420_s15 = smov 0  }
   0x3 LB: > { %s3435_s16 = sadd.s32 4294967295, %s3389_s15   ;;  %s2828_s17 = sadd.s32 4294967294, %s3389_s15   ;;  %s3389_s15 = sphi %s3420_s15, %s4282_s15   ;;  %s3385_s14 = sphi %s3418_s14, %s4281_s14   ;;  %s3381_s13 = sphi %s3416_s13, %s4280_s13   ;;  %s3377_s12 = sphi %s3414_s12, %s4279_s12  }
   0x4   : > { %s3439_s18 = sadd.s32 1, %s3389_s15   ;;  %s91_s19 = sadd.s32 1, %s3385_s14 }
   0x5   : > { %s88_s20 = ssub.s32 %s3389_s15, %s3439_s18  ;;  %p101_p0 = scmp.ne.s32.totalorder %s3385_s14, %s3381_s13 }
   0x6   : > { %p89_p1 = scmp.eq.s32.totalorder %s88_s20, 0  ;;  %p102_p2 = scmp.eq.s32.totalorder %s3435_s16, 1 }
   0x7   : > { %p107_p3 = scmp.ne.s32.totalorder %s3381_s13, %s3377_s12  ;;  %p108_p4 = scmp.eq.s32.totalorder %s2828_s17, 1 }
   0x8   : > { %s3450_s21 = scalar_select %p89_p1, %s3385_s14, %s91_s19  }
   0x9   : > { %p3452_p5 = por %p102_p2, %p101_p0  ;;  %p3456_p6 = por %p108_p4, %p107_p3 }
   0xa   : > { %p2831_p7 = scmp.ge.s32.totalorder %s3389_s15, 1  ;;  %p140_p8 = scmp.lt.s32.totalorder %s3389_s15, 3 }
   0xc   : > { %p141_p9 = pnand %p2831_p7, %p140_p8 }
   0xd   : > { %p164_p10 = scmp.lt.s32.totalorder (!%p141_p9), %s3435_s16, 1  ;;  %s161_s4 = sand.u32 (!%p141_p9), 1, %s3381_s13  }
   0xe   : > { %144 = sbr.rel (%p141_p9) target bundleno = 748 (0x2ec), region = 32  ;;  %s2832_s5 = sshll.u32 (!%p141_p9), %s161_s4, 7 }
   0xf   : > { %s4038_s6 = scalar_lea.vmem (!%p141_p9), [#allocation2], %s2832_s5  ;;  %s3278_s7 = sshll.u32 (!%p141_p9), %s3435_s16, 7 }
  0x10   : > { %s2572_s10 = scalar_lea.hbm (!%p141_p9), %s4276_s3, %s3278_s7  ;;  %s2573_s19 = sshll.u32 (!%p141_p9), %s4038_s6, 4  ;;  %s2574_s19 = int_to_ptr.vmem [resolvable:$true] %s2573_s19 }
  0x11   : > { %s2575_s20 = sshll.u32 (!%p141_p9), %s2572_s10, 4  ;;  %s3347_s28 = scalar_lea.hbm (!%p141_p9), %s4276_s3, 256  ;;  %s2576_s20 = int_to_ptr.hbm [resolvable:$true] %s2575_s20 }
  0x12   : > { %s3341_s24 = sshra.s32 (!%p141_p9), %s2576_s20, 4  ;;  %s3342_s24 = int_to_ptr.hbm [resolvable:$true] %s3341_s24 }
  0x13   : > { %v2897_v0 = vld [vmem:[%s4274_s1 + $0x2] sm:$0x3]  ;;  %vm381_vm0 = vcmask 1040384   ;;  %vm382_vm1 = vcmask 1041408   ;;  %v3391_v1 = vmov 65535   ;;  %s165_s30 = scalar_select %p164_p10, %s3435_s16, 1 }
  0x14   : > { %v383_v2 = vsel %vm381_vm0, 4294967295, %v3391_v1  ;;  %v2962_v3 = vld [vmem:[%s4274_s1 + $0x4] sm:$0x3]  ;;  %v3011_v4 = vld [vmem:[%s4274_s1 + $0x6] sm:$0x3]  ;;  %vm332_vm2 = vcmask 23552   ;;  %p3348_p0 = scmp.lt.s32.totalorder %s3342_s24, %s4276_s3 }
  0x15   : > { %v3472_v5 = vsel %vm382_vm1, %v383_v2, 0  ;;  %v249_v6 = vld [vmem:[%s4274_s1] sm:$0x3]  ;;  %v3060_v7 = vld [vmem:[%s4274_s1 + $0x8] sm:$0x3]  ;;  %s3282_s8 = smul.u32 1320, %s165_s30 }
  0x16   : > { %v386_v8 = vand.u32 %v2897_v0, %v3472_v5  ;;  %v748_v9 = vand.u32 %v2962_v3, %v3472_v5  ;;  %v1002_v10 = vand.u32 %v3011_v4, %v3472_v5  ;;  %v526_v11 = vand.u32 %v3472_v5, %v249_v6  ;;  %v3158_v49 = vld [vmem:[%s4274_s1 + $0xc] sm:$0x3]  ;;  %v3207_v51 = vld [vmem:[%s4274_s1 + $0xe] sm:$0x3]  ;;  %v3109_v52 = vld [vmem:[%s4274_s1 + $0xa] sm:$0x3] }
  0x17   : > { %v1256_v12 = vand.u32 %v3060_v7, %v3472_v5  ;;  %s3489_s11 = scalar_lea.vmem %s4273_s0, %s3282_s8  ;;  %v1764_v50 = vand.u32 %v3158_v49, %v3472_v5  ;;  %v3256_v53 = vld [vmem:[%s4274_s1 + $0x10] sm:$0x3]  ;;  %v2018_v54 = vand.u32 %v3207_v51, %v3472_v5  ;;  %v1510_v55 = vand.u32 %v3109_v52, %v3472_v5  ;;  %s2561_s16 = scalar_lea.sflag [#allocation3], %s161_s4 }
  0x18   : > { %3279 = vmatpush.bf16.msra.mxu1 %v386_v8  ;;  %3280 = vmatpush.bf16.msra.mxu2 %v386_v8  ;;  %v2873_v13 = vld [vmem:[%s3489_s11 + $0x141] ss:$2 sm:$0xff]  ;;  %v2874_v14 = vld [vmem:[%s3489_s11 + $0x151] ss:$2 sm:$0xff]  ;;  %v2272_v56 = vand.u32 %v3256_v53, %v3472_v5  ;;  %v170_v5 = vld [vmem:[%s3489_s11] ss:$2 sm:$0xff] }
  0x19   : > { %3281 = vmatpush.bf16.msra.mxu3 %v386_v8  ;;  %395 = vmatpush.bf16.msra.mxu0 %v386_v8  ;;  %v2881_v15 = vld [vmem:[%s3489_s11 + $0x281] ss:$2 sm:$0xff]  ;;  %v318_v16 = vpack.c.bf16 %v2874_v14, %v2873_v13  ;;  %v2882_v17 = vld [vmem:[%s3489_s11 + $0x291] ss:$2 sm:$0xff]  ;;  %v2834_v6 = vld [vmem:[%s3489_s11 + $0x10] ss:$2 sm:$0xff] }
  0x1a   : > { %v2889_v18 = vld [vmem:[%s3489_s11 + $0x3c1] ss:$2 sm:$0xff]  ;;  %v2890_v19 = vld [vmem:[%s3489_s11 + $0x3d1] ss:$2 sm:$0xff]  ;;  %v322_v20 = vpack.c.bf16 %v2882_v17, %v2881_v15  ;;  %v2930_v7 = vld [vmem:[%s3489_s11 + $0x2] ss:$2 sm:$0xff]  ;;  %v233_v13 = vpack.c.bf16 %v2834_v6, %v170_v5 }
  0x1b   : > { %v326_v21 = vpack.c.bf16 %v2890_v19, %v2889_v18  ;;  %v2865_v22 = vld [vmem:[%s3489_s11 + $0x1] ss:$2 sm:$0xff]  ;;  %v2866_v23 = vld [vmem:[%s3489_s11 + $0x11] ss:$2 sm:$0xff]  ;;  %2902 = vmatmul.msk.bf16.vlgmr.msra.gmra.mxu1 %vm332_vm2, %v318_v16  ;;  %v2931_v8 = vld [vmem:[%s3489_s11 + $0x12] ss:$2 sm:$0xff] }
  0x1c   : > { %757 = vmatpush.bf16.msrb.mxu2 %v748_v9  ;;  %535 = vmatpush.bf16.msrb.mxu1 %v526_v11  ;;  %v314_v24 = vpack.c.bf16 %v2866_v23, %v2865_v22  ;;  %v2875_v25 = vld [vmem:[%s3489_s11 + $0x191] ss:$2 sm:$0xff]  ;;  %v2876_v26 = vld [vmem:[%s3489_s11 + $0x1a1] ss:$2 sm:$0xff]  ;;  %v2979_v9 = vld [vmem:[%s3489_s11 + $0x28] ss:$2 sm:$0xff]  ;;  %v681_v14 = vpack.c.bf16 %v2931_v8, %v2930_v7 }
  0x1d   : > { %1011 = vmatpush.bf16.msrb.mxu3 %v1002_v10  ;;  %1265 = vmatpush.bf16.msrb.mxu0 %v1256_v12  ;;  %v2883_v27 = vld [vmem:[%s3489_s11 + $0x2d1] ss:$2 sm:$0xff]  ;;  %v2884_v28 = vld [vmem:[%s3489_s11 + $0x2e1] ss:$2 sm:$0xff]  ;;  %v319_v33 = vpack.c.bf16 %v2876_v26, %v2875_v25  ;;  %v2980_v10 = vld [vmem:[%s3489_s11 + $0x38] ss:$2 sm:$0xff] }
  0x1e   : > { %2906 = vmatmul.msk.bf16.vlgmr.msra.gmra.mxu2 %vm332_vm2, %v322_v20  ;;  %2910 = vmatmul.msk.bf16.vlgmr.msra.gmra.mxu3 %vm332_vm2, %v326_v21  ;;  %v2891_v29 = vld [vmem:[%s3489_s11 + $0x411] ss:$2 sm:$0xff]  ;;  %v2892_v30 = vld [vmem:[%s3489_s11 + $0x421] ss:$2 sm:$0xff]  ;;  %v323_v34 = vpack.c.bf16 %v2884_v28, %v2883_v27  ;;  %v935_v15 = vpack.c.bf16 %v2980_v10, %v2979_v9  ;;  %v2835_v17 = vld [vmem:[%s3489_s11 + $0x50] ss:$2 sm:$0xff] }
  0x1f   : > { %2898 = vmatmul.msk.bf16.vlgmr.msra.gmra.mxu0 %vm332_vm2, %v314_v24  ;;  %v2867_v31 = vld [vmem:[%s3489_s11 + $0x51] ss:$2 sm:$0xff]  ;;  %v2868_v32 = vld [vmem:[%s3489_s11 + $0x61] ss:$2 sm:$0xff]  ;;  %v327_v35 = vpack.c.bf16 %v2892_v30, %v2891_v29  ;;  %v2836_v18 = vld [vmem:[%s3489_s11 + $0x60] ss:$2 sm:$0xff] }
  0x20   : > { %v315_v36 = vpack.c.bf16 %v2868_v32, %v2867_v31  ;;  %v2877_v37 = vld [vmem:[%s3489_s11 + $0x1e1] ss:$2 sm:$0xff]  ;;  %v2878_v38 = vld [vmem:[%s3489_s11 + $0x1f1] ss:$2 sm:$0xff]  ;;  %1773 = vmatpush.bf16.msra.mxu2 %v1764_v50  ;;  %1519 = vmatpush.bf16.msra.mxu1 %v1510_v55  ;;  %v2932_v19 = vld [vmem:[%s3489_s11 + $0x52] ss:$2 sm:$0xff]  ;;  %v234_v25 = vpack.c.bf16 %v2836_v18, %v2835_v17 }
  0x21   : > { %v2885_v39 = vld [vmem:[%s3489_s11 + $0x321] ss:$2 sm:$0xff]  ;;  %v2886_v40 = vld [vmem:[%s3489_s11 + $0x331] ss:$2 sm:$0xff]  ;;  %v320_v45 = vpack.c.bf16 %v2878_v38, %v2877_v37  ;;  %2027 = vmatpush.bf16.msra.mxu3 %v2018_v54  ;;  %2281 = vmatpush.bf16.msra.mxu0 %v2272_v56  ;;  %v2933_v20 = vld [vmem:[%s3489_s11 + $0x62] ss:$2 sm:$0xff] }
  0x22   : > { %v2893_v41 = vld [vmem:[%s3489_s11 + $0x461] ss:$2 sm:$0xff]  ;;  %v2894_v42 = vld [vmem:[%s3489_s11 + $0x471] ss:$2 sm:$0xff]  ;;  %v324_v46 = vpack.c.bf16 %v2886_v40, %v2885_v39  ;;  %v2981_v21 = vld [vmem:[%s3489_s11 + $0x78] ss:$2 sm:$0xff]  ;;  %v682_v26 = vpack.c.bf16 %v2933_v20, %v2932_v19 }
  0x23   : > { %v2869_v43 = vld [vmem:[%s3489_s11 + $0xa1] ss:$2 sm:$0xff]  ;;  %v2870_v44 = vld [vmem:[%s3489_s11 + $0xb1] ss:$2 sm:$0xff]  ;;  %v328_v47 = vpack.c.bf16 %v2894_v42, %v2893_v41  ;;  %v2982_v22 = vld [vmem:[%s3489_s11 + $0x88] ss:$2 sm:$0xff] }
  0x24   : > { %v316_v48 = vpack.c.bf16 %v2870_v44, %v2869_v43  ;;  %v2879_v57 = vld [vmem:[%s3489_s11 + $0x231] ss:$2 sm:$0xff]  ;;  %v2880_v58 = vld [vmem:[%s3489_s11 + $0x241] ss:$2 sm:$0xff]  ;;  %v936_v27 = vpack.c.bf16 %v2982_v22, %v2981_v21  ;;  %v2837_v29 = vld [vmem:[%s3489_s11 + $0xa0] ss:$2 sm:$0xff] }
  0x25   : > { %v2887_v59 = vld [vmem:[%s3489_s11 + $0x371] ss:$2 sm:$0xff]  ;;  %v2888_v60 = vld [vmem:[%s3489_s11 + $0x381] ss:$2 sm:$0xff]  ;;  %v321_v1 = vpack.c.bf16 %v2880_v58, %v2879_v57  ;;  %v2838_v30 = vld [vmem:[%s3489_s11 + $0xb0] ss:$2 sm:$0xff] }
  0x26   : > { %v2895_v61 = vld [vmem:[%s3489_s11 + $0x4b1] ss:$2 sm:$0xff]  ;;  %v2896_v62 = vld [vmem:[%s3489_s11 + $0x4c1] ss:$2 sm:$0xff]  ;;  %v325_v2 = vpack.c.bf16 %v2888_v60, %v2887_v59  ;;  %v2934_v31 = vld [vmem:[%s3489_s11 + $0xa2] ss:$2 sm:$0xff]  ;;  %v235_v37 = vpack.c.bf16 %v2838_v30, %v2837_v29 }
  0x27   : > { %v2871_v63 = vld [vmem:[%s3489_s11 + $0xf1] ss:$2 sm:$0xff]  ;;  %v2872_v0 = vld [vmem:[%s3489_s11 + $0x101] ss:$2 sm:$0xff]  ;;  %v329_v3 = vpack.c.bf16 %v2896_v62, %v2895_v61  ;;  %v2935_v32 = vld [vmem:[%s3489_s11 + $0xb2] ss:$2 sm:$0xff] }
  0x28   : > { %v317_v4 = vpack.c.bf16 %v2872_v0, %v2871_v63  ;;  %v3028_v11 = vld [vmem:[%s3489_s11 + $0x29] ss:$2 sm:$0xff]  ;;  %v3029_v12 = vld [vmem:[%s3489_s11 + $0x39] ss:$2 sm:$0xff]  ;;  %v683_v38 = vpack.c.bf16 %v2935_v32, %v2934_v31  ;;  %v2839_v41 = vld [vmem:[%s3489_s11 + $0xf0] ss:$2 sm:$0xff] }
  0x29   : > { %v1189_v16 = vpack.c.bf16 %v3029_v12, %v3028_v11  ;;  %v3030_v23 = vld [vmem:[%s3489_s11 + $0x79] ss:$2 sm:$0xff]  ;;  %v3031_v24 = vld [vmem:[%s3489_s11 + $0x89] ss:$2 sm:$0xff]  ;;  %v2840_v42 = vld [vmem:[%s3489_s11 + $0x100] ss:$2 sm:$0xff] }
  0x2a   : > { %v1190_v28 = vpack.c.bf16 %v3031_v24, %v3030_v23  ;;  %v2936_v43 = vld [vmem:[%s3489_s11 + $0xf2] ss:$2 sm:$0xff]  ;;  %v2937_v44 = vld [vmem:[%s3489_s11 + $0x102] ss:$2 sm:$0xff]  ;;  %v236_v49 = vpack.c.bf16 %v2840_v42, %v2839_v41  ;;  %v3036_v59 = vld [vmem:[%s3489_s11 + $0x169] ss:$2 sm:$0xff] }
  0x2b   : > { %2903 = vmatmul.msk.bf16.gmra.mxu1 %vm332_vm2, %v319_v33  ;;  %v2983_v33 = vld [vmem:[%s3489_s11 + $0xc8] ss:$2 sm:$0xff]  ;;  %v684_v50 = vpack.c.bf16 %v2937_v44, %v2936_v43  ;;  %v2988_v58 = vld [vmem:[%s3489_s11 + $0x178] ss:$2 sm:$0xff]  ;;  %v3037_v60 = vld [vmem:[%s3489_s11 + $0x179] ss:$2 sm:$0xff] }
  0x2c   : > { %v2841_v53 = vld [vmem:[%s3489_s11 + $0x140] ss:$2 sm:$0xff]  ;;  %v2842_v54 = vld [vmem:[%s3489_s11 + $0x150] ss:$2 sm:$0xff]  ;;  %vm2527_vm3 = vcmask 257024   ;;  %s3343_s25 = scalar_lea.hbm %s3342_s24, 128 }
  0x2d   : > { %v2938_v55 = vld [vmem:[%s3489_s11 + $0x142] ss:$2 sm:$0xff]  ;;  %v2939_v56 = vld [vmem:[%s3489_s11 + $0x152] ss:$2 sm:$0xff]  ;;  %v237_v61 = vpack.c.bf16 %v2842_v54, %v2841_v53  ;;  %v3042_v53 = vld [vmem:[%s3489_s11 + $0x259] ss:$2 sm:$0xff]  ;;  %p3344_p11 = scmp.ne.s32.totalorder %s3342_s24, %s3343_s25  ;;  %p3349_p1 = scmp.lt.s32.totalorder %s3347_s28, %s3343_s25 }
  0x2e   : > { %2907 = vmatmul.msk.bf16.gmra.mxu2 %vm332_vm2, %v323_v34  ;;  %2911 = vmatmul.msk.bf16.gmra.mxu3 %vm332_vm2, %v327_v35  ;;  %v2984_v34 = vld [vmem:[%s3489_s11 + $0xd8] ss:$2 sm:$0xff]  ;;  %v3032_v35 = vld [vmem:[%s3489_s11 + $0xc9] ss:$2 sm:$0xff]  ;;  %v2987_v57 = vld [vmem:[%s3489_s11 + $0x168] ss:$2 sm:$0xff]  ;;  %v685_v63 = vpack.c.bf16 %v2939_v56, %v2938_v55 }
  0x2f   : > { %2899 = vmatmul.msk.bf16.gmra.mxu0 %vm332_vm2, %v315_v36  ;;  %v3033_v36 = vld [vmem:[%s3489_s11 + $0xd9] ss:$2 sm:$0xff]  ;;  %v937_v39 = vpack.c.bf16 %v2984_v34, %v2983_v33  ;;  %v939_v0 = vpack.c.bf16 %v2988_v58, %v2987_v57  ;;  %v2843_v7 = vld [vmem:[%s3489_s11 + $0x190] ss:$2 sm:$0xff]  ;;  %v2844_v8 = vld [vmem:[%s3489_s11 + $0x1a0] ss:$2 sm:$0xff]  ;;  %p3345_p12 = pnand %p3344_p11, %p3452_p5  ;;  %p3350_p2 = por %p3349_p1, %p3348_p0 }
  0x30   : > { %v1191_v40 = vpack.c.bf16 %v3033_v36, %v3032_v35  ;;  %v2940_v9 = vld [vmem:[%s3489_s11 + $0x192] ss:$2 sm:$0xff]  ;;  %v2941_v10 = vld [vmem:[%s3489_s11 + $0x1a2] ss:$2 sm:$0xff]  ;;  %v238_v17 = vpack.c.bf16 %v2844_v8, %v2843_v7  ;;  %v3040_v33 = vld [vmem:[%s3489_s11 + $0x209] ss:$2 sm:$0xff] }
  0x31   : > { %v2989_v11 = vld [vmem:[%s3489_s11 + $0x1b8] ss:$2 sm:$0xff]  ;;  %v2990_v12 = vld [vmem:[%s3489_s11 + $0x1c8] ss:$2 sm:$0xff]  ;;  %v686_v19 = vpack.c.bf16 %v2941_v10, %v2940_v9  ;;  %v3041_v34 = vld [vmem:[%s3489_s11 + $0x219] ss:$2 sm:$0xff]  ;;  %p3346_p13 = pneg %p3345_p12 }
  0x32   : > { %v940_v20 = vpack.c.bf16 %v2990_v12, %v2989_v11  ;;  %v2942_v29 = vld [vmem:[%s3489_s11 + $0x1e2] ss:$2 sm:$0xff]  ;;  %v2943_v30 = vld [vmem:[%s3489_s11 + $0x1f2] ss:$2 sm:$0xff]  ;;  %v1195_v41 = vpack.c.bf16 %v3041_v34, %v3040_v33  ;;  %v3043_v54 = vld [vmem:[%s3489_s11 + $0x269] ss:$2 sm:$0xff] }
  0x33   : > { %v2991_v31 = vld [vmem:[%s3489_s11 + $0x208] ss:$2 sm:$0xff]  ;;  %v2992_v32 = vld [vmem:[%s3489_s11 + $0x218] ss:$2 sm:$0xff]  ;;  %p3351_p3 = pnand %p3350_p2, %p3346_p13 }
  0x34   : > { %v2849_v9 = vld [vmem:[%s3489_s11 + $0x280] ss:$2 sm:$0xff]  ;;  %v2850_v10 = vld [vmem:[%s3489_s11 + $0x290] ss:$2 sm:$0xff] }
  0x35   : > { %v2946_v11 = vld [vmem:[%s3489_s11 + $0x282] ss:$2 sm:$0xff]  ;;  %v2947_v12 = vld [vmem:[%s3489_s11 + $0x292] ss:$2 sm:$0xff] }
  0x3b   : > { %2904 = vmatmul.msk.bf16.gmra.mxu1 %vm332_vm2, %v320_v45  ;;  %v2985_v45 = vld [vmem:[%s3489_s11 + $0x118] ss:$2 sm:$0xff] }
  0x3e   : > { %2908 = vmatmul.msk.bf16.gmra.mxu2 %vm332_vm2, %v324_v46  ;;  %2912 = vmatmul.msk.bf16.gmra.mxu3 %vm332_vm2, %v328_v47  ;;  %v2986_v46 = vld [vmem:[%s3489_s11 + $0x128] ss:$2 sm:$0xff]  ;;  %v3034_v47 = vld [vmem:[%s3489_s11 + $0x119] ss:$2 sm:$0xff] }
  0x3f   : > { %2900 = vmatmul.msk.bf16.gmra.mxu0 %vm332_vm2, %v316_v48  ;;  %v3035_v48 = vld [vmem:[%s3489_s11 + $0x129] ss:$2 sm:$0xff]  ;;  %v938_v51 = vpack.c.bf16 %v2986_v46, %v2985_v45 }
  0x40   : > { %v1192_v52 = vpack.c.bf16 %v3035_v48, %v3034_v47  ;;  %v2847_v47 = vld [vmem:[%s3489_s11 + $0x230] ss:$2 sm:$0xff]  ;;  %v2848_v48 = vld [vmem:[%s3489_s11 + $0x240] ss:$2 sm:$0xff] }
  0x41   : > { %v240_v57 = vpack.c.bf16 %v2848_v48, %v2847_v47  ;;  %v2851_v48 = vld [vmem:[%s3489_s11 + $0x2d0] ss:$2 sm:$0xff] }
  0x4b   : > { %2905 = vmatmul.msk.bf16.gmra.mxu1 %vm332_vm2, %v321_v1  ;;  %v1193_v1 = vpack.c.bf16 %v3037_v60, %v3036_v59 }
  0x4e   : > { %2909 = vmatmul.msk.bf16.gmra.mxu2 %vm332_vm2, %v325_v2  ;;  %2913 = vmatmul.msk.bf16.gmra.mxu3 %vm332_vm2, %v329_v3 }
  0x4f   : > { %2901 = vmatmul.msk.bf16.gmra.mxu0 %vm332_vm2, %v317_v4 }
  0x5b   : > { %2914 = vmatmul.msk.bf16.vlgmr.msrb.gmra.mxu1 %vm332_vm2, %v233_v13  ;;  %v3038_v13 = vld [vmem:[%s3489_s11 + $0x1b9] ss:$2 sm:$0xff] }
  0x5e   : > { %2963 = vmatmul.msk.bf16.vlgmr.msrb.gmra.mxu2 %vm332_vm2, %v681_v14  ;;  %3012 = vmatmul.msk.bf16.vlgmr.msrb.gmra.mxu3 %vm332_vm2, %v935_v15  ;;  %v3039_v14 = vld [vmem:[%s3489_s11 + $0x1c9] ss:$2 sm:$0xff] }
  0x5f   : > { %3061 = vmatmul.msk.bf16.vlgmr.msrb.gmra.mxu0 %vm332_vm2, %v1189_v16  ;;  %v1194_v21 = vpack.c.bf16 %v3039_v14, %v3038_v13  ;;  %v2995_v13 = vld [vmem:[%s3489_s11 + $0x2a8] ss:$2 sm:$0xff]  ;;  %v2996_v14 = vld [vmem:[%s3489_s11 + $0x2b8] ss:$2 sm:$0xff] }
  0x6b   : > { %2915 = vmatmul.msk.bf16.gmra.mxu1 %vm332_vm2, %v234_v25 }
  0x6e   : > { %2964 = vmatmul.msk.bf16.gmra.mxu2 %vm332_vm2, %v682_v26  ;;  %3013 = vmatmul.msk.bf16.gmra.mxu3 %vm332_vm2, %v936_v27  ;;  %v2845_v27 = vld [vmem:[%s3489_s11 + $0x1e0] ss:$2 sm:$0xff] }
  0x6f   : > { %3062 = vmatmul.msk.bf16.gmra.mxu0 %vm332_vm2, %v1190_v28  ;;  %v2846_v28 = vld [vmem:[%s3489_s11 + $0x1f0] ss:$2 sm:$0xff] }
  0x7b   : > { %2916 = vmatmul.msk.bf16.gmra.mxu1 %vm332_vm2, %v235_v37  ;;  %v239_v37 = vpack.c.bf16 %v2846_v28, %v2845_v27  ;;  %v241_v27 = vpack.c.bf16 %v2850_v10, %v2849_v9 }
  0x7e   : > { %2965 = vmatmul.msk.bf16.gmra.mxu2 %vm332_vm2, %v683_v38  ;;  %3014 = vmatmul.msk.bf16.gmra.mxu3 %vm332_vm2, %v937_v39  ;;  %v687_v39 = vpack.c.bf16 %v2943_v30, %v2942_v29  ;;  %v689_v29 = vpack.c.bf16 %v2947_v12, %v2946_v11  ;;  %v943_v30 = vpack.c.bf16 %v2996_v14, %v2995_v13 }
  0x7f   : > { %3063 = vmatmul.msk.bf16.gmra.mxu0 %vm332_vm2, %v1191_v40  ;;  %v941_v40 = vpack.c.bf16 %v2992_v32, %v2991_v31 }
  0x8b   : > { %2917 = vmatmul.msk.bf16.gmra.mxu1 %vm332_vm2, %v236_v49  ;;  %v2944_v49 = vld [vmem:[%s3489_s11 + $0x232] ss:$2 sm:$0xff] }
  0x8e   : > { %2966 = vmatmul.msk.bf16.gmra.mxu2 %vm332_vm2, %v684_v50  ;;  %3015 = vmatmul.msk.bf16.gmra.mxu3 %vm332_vm2, %v938_v51  ;;  %v2945_v50 = vld [vmem:[%s3489_s11 + $0x242] ss:$2 sm:$0xff] }
  0x8f   : > { %3064 = vmatmul.msk.bf16.gmra.mxu0 %vm332_vm2, %v1192_v52  ;;  %v2993_v51 = vld [vmem:[%s3489_s11 + $0x258] ss:$2 sm:$0xff]  ;;  %v2994_v52 = vld [vmem:[%s3489_s11 + $0x268] ss:$2 sm:$0xff]  ;;  %v688_v59 = vpack.c.bf16 %v2945_v50, %v2944_v49 }
  0x90   : > { %v942_v60 = vpack.c.bf16 %v2994_v52, %v2993_v51  ;;  %v2852_v49 = vld [vmem:[%s3489_s11 + $0x2e0] ss:$2 sm:$0xff] }
  0x91   : > { %v2948_v50 = vld [vmem:[%s3489_s11 + $0x2d2] ss:$2 sm:$0xff]  ;;  %v2949_v52 = vld [vmem:[%s3489_s11 + $0x2e2] ss:$2 sm:$0xff]  ;;  %v242_v9 = vpack.c.bf16 %v2852_v49, %v2851_v48  ;;  %v3048_v48 = vld [vmem:[%s3489_s11 + $0x349] ss:$2 sm:$0xff] }
  0x92   : > { %v690_v12 = vpack.c.bf16 %v2949_v52, %v2948_v50  ;;  %v3049_v49 = vld [vmem:[%s3489_s11 + $0x359] ss:$2 sm:$0xff] }
  0x98   : > { %v3611_v62 = vpop.f32.mrf.mxu1 }
  0x9b   : > { %2918 = vmatmul.msk.bf16.gmra.mxu1 %vm332_vm2, %v237_v61  ;;  %v1196_v61 = vpack.c.bf16 %v3043_v54, %v3042_v53  ;;  %v2997_v53 = vld [vmem:[%s3489_s11 + $0x2f8] ss:$2 sm:$0xff]  ;;  %v2998_v54 = vld [vmem:[%s3489_s11 + $0x308] ss:$2 sm:$0xff] }
  0x9c   : > { %v3613_v2 = vpop.f32.mrf.mxu0  ;;  %v944_v13 = vpack.c.bf16 %v2998_v54, %v2997_v53 }
  0x9e   : > { %2967 = vmatmul.msk.bf16.gmra.mxu2 %vm332_vm2, %v685_v63  ;;  %3016 = vmatmul.msk.bf16.gmra.mxu3 %vm332_vm2, %v939_v0 }
  0x9f   : > { %3065 = vmatmul.msk.bf16.gmra.mxu0 %vm332_vm2, %v1193_v1 }
  0xa0   : > { %v3623_v5 = vpop.f32.mrf.mxu1 }
  0xa1   : > { %v3619_v3 = vpop.f32.mrf.mxu2  ;;  %v3621_v4 = vpop.f32.mrf.mxu3 }
  0xa4   : > { %v3625_v6 = vpop.f32.mrf.mxu0 }
  0xa8   : > { %v3639_v18 = vpop.f32.mrf.mxu1 }
  0xa9   : > { %v3635_v15 = vpop.f32.mrf.mxu2  ;;  %v3637_v16 = vpop.f32.mrf.mxu3 }
  0xab   : > { %2919 = vmatmul.msk.bf16.gmra.mxu1 %vm332_vm2, %v238_v17  ;;  %v3044_v17 = vld [vmem:[%s3489_s11 + $0x2a9] ss:$2 sm:$0xff] }
  0xac   : > { %v3641_v22 = vpop.f32.mrf.mxu0 }
  0xae   : > { %2968 = vmatmul.msk.bf16.gmra.mxu2 %vm332_vm2, %v686_v19  ;;  %3017 = vmatmul.msk.bf16.gmra.mxu3 %vm332_vm2, %v940_v20  ;;  %v3045_v19 = vld [vmem:[%s3489_s11 + $0x2b9] ss:$2 sm:$0xff] }
  0xaf   : > { %3066 = vmatmul.msk.bf16.gmra.mxu0 %vm332_vm2, %v1194_v21  ;;  %v1197_v32 = vpack.c.bf16 %v3045_v19, %v3044_v17 }
  0xb0   : > { %v3651_v25 = vpop.f32.mrf.mxu1 }
  0xb1   : > { %v3647_v23 = vpop.f32.mrf.mxu2  ;;  %v3649_v24 = vpop.f32.mrf.mxu3 }
  0xb4   : > { %v3653_v26 = vpop.f32.mrf.mxu0 }
  0xb8   : > { %v3667_v38 = vpop.f32.mrf.mxu1 }
  0xb9   : > { %v3663_v35 = vpop.f32.mrf.mxu2  ;;  %v3665_v36 = vpop.f32.mrf.mxu3 }
  0xbb   : > { %2920 = vmatmul.msk.bf16.gmra.mxu1 %vm332_vm2, %v239_v37 }
  0xbc   : > { %v3669_v42 = vpop.f32.mrf.mxu0 }
  0xbe   : > { %2969 = vmatmul.msk.bf16.gmra.mxu2 %vm332_vm2, %v687_v39  ;;  %3018 = vmatmul.msk.bf16.gmra.mxu3 %vm332_vm2, %v941_v40 }
  0xbf   : > { %3067 = vmatmul.msk.bf16.gmra.mxu0 %vm332_vm2, %v1195_v41 }
  0xc0   : > { %v3679_v45 = vpop.f32.mrf.mxu1 }
  0xc1   : > { %v3675_v43 = vpop.f32.mrf.mxu2  ;;  %v3677_v44 = vpop.f32.mrf.mxu3 }
  0xc4   : > { %v3681_v46 = vpop.f32.mrf.mxu0 }
  0xc8   : > { %v3695_v58 = vpop.f32.mrf.mxu1 }
  0xc9   : > { %v3691_v55 = vpop.f32.mrf.mxu2  ;;  %v3693_v56 = vpop.f32.mrf.mxu3 }
  0xcb   : > { %2921 = vmatmul.msk.bf16.gmra.mxu1 %vm332_vm2, %v240_v57  ;;  %v3046_v57 = vld [vmem:[%s3489_s11 + $0x2f9] ss:$2 sm:$0xff] }
  0xcc   : > { %v3697_v63 = vpop.f32.mrf.mxu0 }
  0xce   : > { %2970 = vmatmul.msk.bf16.gmra.mxu2 %vm332_vm2, %v688_v59  ;;  %3019 = vmatmul.msk.bf16.gmra.mxu3 %vm332_vm2, %v942_v60  ;;  %v3047_v59 = vld [vmem:[%s3489_s11 + $0x309] ss:$2 sm:$0xff] }
  0xcf   : > { %3068 = vmatmul.msk.bf16.gmra.mxu0 %vm332_vm2, %v1196_v61  ;;  %v1198_v14 = vpack.c.bf16 %v3047_v59, %v3046_v57 }
  0xd0   : > { %v3707_v7 = vpop.f32.mrf.mxu1 }
  0xd1   : > { %v3703_v0 = vpop.f32.mrf.mxu2  ;;  %v3705_v1 = vpop.f32.mrf.mxu3 }
  0xd4   : > { %v3709_v8 = vpop.f32.mrf.mxu0 }
  0xd8   : > { %v537_v28 = vpop.f32.mrf.mxu1 }
  0xd9   : > { %v3719_v20 = vpop.f32.mrf.mxu2  ;;  %v3721_v21 = vpop.f32.mrf.mxu3  ;;  %v538_v31 = vadd.f32 %v537_v28, %v3613_v2 }
  0xdb   : > { %2922 = vmatmul.msk.bf16.gmra.mxu1 %vm332_vm2, %v241_v27 }
  0xdc   : > { %v1267_v33 = vpop.f32.mrf.mxu0 }
  0xde   : > { %2971 = vmatmul.msk.bf16.gmra.mxu2 %vm332_vm2, %v689_v29  ;;  %3020 = vmatmul.msk.bf16.gmra.mxu3 %vm332_vm2, %v943_v30 }
  0xdf   : > { %3069 = vmatmul.msk.bf16.gmra.mxu0 %vm332_vm2, %v1197_v32 }
  0xe0   : > { %v539_v2 = vpop.f32.mrf.mxu1 }
  0xe1   : > { %v759_v34 = vpop.f32.mrf.mxu2  ;;  %v1013_v37 = vpop.f32.mrf.mxu3  ;;  %v540_v40 = vadd.f32 %v539_v2, %v3625_v6 }
  0xe2   : > { %v839_v39 = vadd.f32 %v759_v34, %v538_v31  ;;  %v2853_v34 = vld [vmem:[%s3489_s11 + $0x320] ss:$2 sm:$0xff] }
  0xe4   : > { %v1093_v41 = vadd.f32 %v1013_v37, %v839_v39  ;;  %v1269_v47 = vpop.f32.mrf.mxu0  ;;  %v2854_v37 = vld [vmem:[%s3489_s11 + $0x330] ss:$2 sm:$0xff] }
  0xe5   : > { %v2950_v39 = vld [vmem:[%s3489_s11 + $0x322] ss:$2 sm:$0xff]  ;;  %v243_v53 = vpack.c.bf16 %v2854_v37, %v2853_v34  ;;  %v3050_v34 = vld [vmem:[%s3489_s11 + $0x399] ss:$2 sm:$0xff]  ;;  %v3051_v37 = vld [vmem:[%s3489_s11 + $0x3a9] ss:$2 sm:$0xff] }
  0xe6   : > { %v3732_v51 = vadd.f32 %v1267_v33, %v1093_v41  ;;  %v2999_v41 = vld [vmem:[%s3489_s11 + $0x348] ss:$2 sm:$0xff] }
  0xe8   : > { %v542_v11 = vpop.f32.mrf.mxu1 }
  0xe9   : > { %v761_v60 = vpop.f32.mrf.mxu2  ;;  %v1015_v61 = vpop.f32.mrf.mxu3  ;;  %v543_v6 = vadd.f32 %v542_v11, %v3641_v22 }
  0xea   : > { %v840_v10 = vadd.f32 %v761_v60, %v540_v40  ;;  %v2951_v40 = vld [vmem:[%s3489_s11 + $0x332] ss:$2 sm:$0xff] }
  0xeb   : > { %2923 = vmatmul.msk.bf16.gmra.mxu1 %vm332_vm2, %v242_v9  ;;  %v691_v59 = vpack.c.bf16 %v2951_v40, %v2950_v39 }
  0xec   : > { %v1094_v17 = vadd.f32 %v1015_v61, %v840_v10  ;;  %v1272_v19 = vpop.f32.mrf.mxu0  ;;  %v1199_v61 = vpack.c.bf16 %v3049_v49, %v3048_v48 }
  0xee   : > { %2972 = vmatmul.msk.bf16.gmra.mxu2 %vm332_vm2, %v690_v12  ;;  %3021 = vmatmul.msk.bf16.gmra.mxu3 %vm332_vm2, %v944_v13  ;;  %v3743_v27 = vadd.f32 %v1269_v47, %v1094_v17  ;;  %v3000_v47 = vld [vmem:[%s3489_s11 + $0x358] ss:$2 sm:$0xff] }
  0xef   : > { %3070 = vmatmul.msk.bf16.gmra.mxu0 %vm332_vm2, %v1198_v14  ;;  %v945_v60 = vpack.c.bf16 %v3000_v47, %v2999_v41 }
  0xf0   : > { %v544_v30 = vpop.f32.mrf.mxu1 }
  0xf1   : > { %v764_v22 = vpop.f32.mrf.mxu2  ;;  %v1018_v28 = vpop.f32.mrf.mxu3  ;;  %v545_v31 = vadd.f32 %v544_v30, %v3653_v26 }
  0xf2   : > { %v841_v29 = vadd.f32 %v764_v22, %v543_v6  ;;  %v2855_v22 = vld [vmem:[%s3489_s11 + $0x370] ss:$2 sm:$0xff] }
  0xf4   : > { %v1095_v32 = vadd.f32 %v1018_v28, %v841_v29  ;;  %v1274_v33 = vpop.f32.mrf.mxu0  ;;  %v2856_v28 = vld [vmem:[%s3489_s11 + $0x380] ss:$2 sm:$0xff] }
  0xf5   : > { %v2952_v29 = vld [vmem:[%s3489_s11 + $0x372] ss:$2 sm:$0xff]  ;;  %v244_v41 = vpack.c.bf16 %v2856_v28, %v2855_v22  ;;  %v3052_v22 = vld [vmem:[%s3489_s11 + $0x3e9] ss:$2 sm:$0xff]  ;;  %v3053_v28 = vld [vmem:[%s3489_s11 + $0x3f9] ss:$2 sm:$0xff] }
  0xf6   : > { %v3750_v2 = vadd.f32 %v1272_v19, %v1095_v32  ;;  %v3001_v32 = vld [vmem:[%s3489_s11 + $0x398] ss:$2 sm:$0xff] }
  0xf8   : > { %v547_v57 = vpop.f32.mrf.mxu1 }
  0xf9   : > { %v766_v50 = vpop.f32.mrf.mxu2  ;;  %v1020_v52 = vpop.f32.mrf.mxu3  ;;  %v548_v26 = vadd.f32 %v547_v57, %v3669_v42 }
  0xfa   : > { %v842_v54 = vadd.f32 %v766_v50, %v545_v31  ;;  %v2953_v31 = vld [vmem:[%s3489_s11 + $0x382] ss:$2 sm:$0xff] }
  0xfb   : > { %2924 = vmatmul.msk.bf16.gmra.mxu1 %vm332_vm2, %v243_v53  ;;  %v692_v49 = vpack.c.bf16 %v2953_v31, %v2952_v29 }
  0xfc   : > { %v1096_v9 = vadd.f32 %v1020_v52, %v842_v54  ;;  %v1277_v10 = vpop.f32.mrf.mxu0  ;;  %v1200_v52 = vpack.c.bf16 %v3051_v37, %v3050_v34 }
  0xfe   : > { %2973 = vmatmul.msk.bf16.gmra.mxu2 %vm332_vm2, %v691_v59  ;;  %3022 = vmatmul.msk.bf16.gmra.mxu3 %vm332_vm2, %v945_v60  ;;  %v3761_v11 = vadd.f32 %v1274_v33, %v1096_v9  ;;  %v3002_v33 = vld [vmem:[%s3489_s11 + $0x3a8] ss:$2 sm:$0xff] }
  0xff   : > { %3071 = vmatmul.msk.bf16.gmra.mxu0 %vm332_vm2, %v1199_v61  ;;  %v946_v50 = vpack.c.bf16 %v3002_v33, %v3001_v32 }
 0x100   : > { %v549_v6 = vpop.f32.mrf.mxu1 }
 0x101   : > { %v769_v42 = vpop.f32.mrf.mxu2  ;;  %v1023_v12 = vpop.f32.mrf.mxu3  ;;  %v550_v14 = vadd.f32 %v549_v6, %v3681_v46 }
 0x102   : > { %v843_v13 = vadd.f32 %v769_v42, %v548_v26  ;;  %v2857_v42 = vld [vmem:[%s3489_s11 + $0x3c0] ss:$2 sm:$0xff] }
 0x104   : > { %v1097_v17 = vadd.f32 %v1023_v12, %v843_v13  ;;  %v1279_v19 = vpop.f32.mrf.mxu0  ;;  %v2858_v12 = vld [vmem:[%s3489_s11 + $0x3d0] ss:$2 sm:$0xff] }
 0x105   : > { %v2954_v13 = vld [vmem:[%s3489_s11 + $0x3c2] ss:$2 sm:$0xff]  ;;  %v245_v32 = vpack.c.bf16 %v2858_v12, %v2857_v42  ;;  %v3054_v12 = vld [vmem:[%s3489_s11 + $0x439] ss:$2 sm:$0xff] }
 0x106   : > { %v3768_v30 = vadd.f32 %v1277_v10, %v1097_v17  ;;  %v3003_v17 = vld [vmem:[%s3489_s11 + $0x3e8] ss:$2 sm:$0xff] }
 0x108   : > { %v552_v48 = vpop.f32.mrf.mxu1 }
 0x109   : > { %v771_v39 = vpop.f32.mrf.mxu2  ;;  %v1025_v40 = vpop.f32.mrf.mxu3  ;;  %v553_v46 = vadd.f32 %v552_v48, %v3697_v63 }
 0x10a   : > { %v844_v47 = vadd.f32 %v771_v39, %v550_v14  ;;  %v2955_v14 = vld [vmem:[%s3489_s11 + $0x3d2] ss:$2 sm:$0xff] }
 0x10b   : > { %2925 = vmatmul.msk.bf16.gmra.mxu1 %vm332_vm2, %v244_v41  ;;  %v693_v37 = vpack.c.bf16 %v2955_v14, %v2954_v13  ;;  %v3055_v13 = vld [vmem:[%s3489_s11 + $0x449] ss:$2 sm:$0xff] }
 0x10c   : > { %v1098_v53 = vadd.f32 %v1025_v40, %v844_v47  ;;  %v1282_v54 = vpop.f32.mrf.mxu0 }
 0x10e   : > { %2974 = vmatmul.msk.bf16.gmra.mxu2 %vm332_vm2, %v692_v49  ;;  %3023 = vmatmul.msk.bf16.gmra.mxu3 %vm332_vm2, %v946_v50  ;;  %v3779_v57 = vadd.f32 %v1279_v19, %v1098_v53  ;;  %v3004_v19 = vld [vmem:[%s3489_s11 + $0x3f8] ss:$2 sm:$0xff] }
 0x10f   : > { %3072 = vmatmul.msk.bf16.gmra.mxu0 %vm332_vm2, %v1200_v52  ;;  %v947_v39 = vpack.c.bf16 %v3004_v19, %v3003_v17 }
 0x110   : > { %v554_v26 = vpop.f32.mrf.mxu1 }
 0x111   : > { %v774_v63 = vpop.f32.mrf.mxu2  ;;  %v1028_v59 = vpop.f32.mrf.mxu3  ;;  %v555_v61 = vadd.f32 %v554_v26, %v3709_v8  ;;  %v1201_v8 = vpack.c.bf16 %v3053_v28, %v3052_v22 }
 0x112   : > { %v845_v60 = vadd.f32 %v774_v63, %v553_v46  ;;  %v2859_v63 = vld [vmem:[%s3489_s11 + $0x410] ss:$2 sm:$0xff] }
 0x114   : > { %v1099_v9 = vadd.f32 %v1028_v59, %v845_v60  ;;  %v1284_v10 = vpop.f32.mrf.mxu0  ;;  %v2860_v59 = vld [vmem:[%s3489_s11 + $0x420] ss:$2 sm:$0xff] }
 0x115   : > { %v2956_v60 = vld [vmem:[%s3489_s11 + $0x412] ss:$2 sm:$0xff]  ;;  %v246_v17 = vpack.c.bf16 %v2860_v59, %v2859_v63 }
 0x116   : > { %v3786_v6 = vadd.f32 %v1282_v54, %v1099_v9  ;;  %v3005_v9 = vld [vmem:[%s3489_s11 + $0x438] ss:$2 sm:$0xff] }
 0x117   : > { %v3008_v63 = vld [vmem:[%s3489_s11 + $0x498] ss:$2 sm:$0xff] }
 0x118   : > { %v557_v34 = vpop.f32.mrf.mxu1 }
 0x119   : > { %v776_v29 = vpop.f32.mrf.mxu2  ;;  %v1030_v31 = vpop.f32.mrf.mxu3  ;;  %v558_v48 = vadd.f32 %v557_v34, %v3611_v62 }
 0x11a   : > { %v846_v33 = vadd.f32 %v776_v29, %v555_v61  ;;  %v2957_v61 = vld [vmem:[%s3489_s11 + $0x422] ss:$2 sm:$0xff] }
 0x11b   : > { %2926 = vmatmul.msk.bf16.gmra.mxu1 %vm332_vm2, %v245_v32  ;;  %v694_v28 = vpack.c.bf16 %v2957_v61, %v2956_v60  ;;  %v3056_v60 = vld [vmem:[%s3489_s11 + $0x489] ss:$2 sm:$0xff]  ;;  %v3057_v61 = vld [vmem:[%s3489_s11 + $0x499] ss:$2 sm:$0xff] }
 0x11c   : > { %v1100_v40 = vadd.f32 %v1030_v31, %v846_v33  ;;  %v1287_v41 = vpop.f32.mrf.mxu0  ;;  %v1202_v31 = vpack.c.bf16 %v3055_v13, %v3054_v12 }
 0x11e   : > { %2975 = vmatmul.msk.bf16.gmra.mxu2 %vm332_vm2, %v693_v37  ;;  %3024 = vmatmul.msk.bf16.gmra.mxu3 %vm332_vm2, %v947_v39  ;;  %v3796_v47 = vadd.f32 %v1284_v10, %v1100_v40  ;;  %v3006_v10 = vld [vmem:[%s3489_s11 + $0x448] ss:$2 sm:$0xff] }
 0x11f   : > { %3073 = vmatmul.msk.bf16.gmra.mxu0 %vm332_vm2, %v1201_v8  ;;  %v948_v29 = vpack.c.bf16 %v3006_v10, %v3005_v9 }
 0x120   : > { %v559_v52 = vpop.f32.mrf.mxu1 }
 0x121   : > { %v779_v49 = vpop.f32.mrf.mxu2  ;;  %v1033_v50 = vpop.f32.mrf.mxu3  ;;  %v560_v42 = vadd.f32 %v559_v52, %v3623_v5 }
 0x122   : > { %v847_v46 = vadd.f32 %v779_v49, %v558_v48  ;;  %v2861_v49 = vld [vmem:[%s3489_s11 + $0x460] ss:$2 sm:$0xff] }
 0x124   : > { %v1101_v53 = vadd.f32 %v1033_v50, %v847_v46  ;;  %v1289_v54 = vpop.f32.mrf.mxu0  ;;  %v2862_v50 = vld [vmem:[%s3489_s11 + $0x470] ss:$2 sm:$0xff] }
 0x125   : > { %v2958_v46 = vld [vmem:[%s3489_s11 + $0x462] ss:$2 sm:$0xff]  ;;  %v247_v10 = vpack.c.bf16 %v2862_v50, %v2861_v49 }
 0x126   : > { %v3803_v26 = vadd.f32 %v1287_v41, %v1101_v53  ;;  %v2959_v53 = vld [vmem:[%s3489_s11 + $0x472] ss:$2 sm:$0xff] }
 0x127   : > { %v695_v13 = vpack.c.bf16 %v2959_v53, %v2958_v46  ;;  %v3010_v49 = vld [vmem:[%s3489_s11 + $0x4e8] ss:$2 sm:$0xff]  ;;  %v3058_v46 = vld [vmem:[%s3489_s11 + $0x4d9] ss:$2 sm:$0xff]  ;;  %v3059_v53 = vld [vmem:[%s3489_s11 + $0x4e9] ss:$2 sm:$0xff] }
 0x128   : > { %v562_v22 = vpop.f32.mrf.mxu1 }
 0x129   : > { %v781_v62 = vpop.f32.mrf.mxu2  ;;  %v1035_v14 = vpop.f32.mrf.mxu3  ;;  %v563_v34 = vadd.f32 %v562_v22, %v3639_v18 }
 0x12a   : > { %v848_v19 = vadd.f32 %v781_v62, %v560_v42 }
 0x12b   : > { %2927 = vmatmul.msk.bf16.gmra.mxu1 %vm332_vm2, %v246_v17 }
 0x12c   : > { %v1102_v32 = vadd.f32 %v1035_v14, %v848_v19  ;;  %v1292_v33 = vpop.f32.mrf.mxu0  ;;  %v1203_v14 = vpack.c.bf16 %v3057_v61, %v3056_v60 }
 0x12e   : > { %2976 = vmatmul.msk.bf16.gmra.mxu2 %vm332_vm2, %v694_v28  ;;  %3025 = vmatmul.msk.bf16.gmra.mxu3 %vm332_vm2, %v948_v29  ;;  %v3814_v5 = vadd.f32 %v1289_v54, %v1102_v32  ;;  %v3007_v54 = vld [vmem:[%s3489_s11 + $0x488] ss:$2 sm:$0xff] }
 0x12f   : > { %3074 = vmatmul.msk.bf16.gmra.mxu0 %vm332_vm2, %v1202_v31  ;;  %v949_v62 = vpack.c.bf16 %v3008_v63, %v3007_v54 }
 0x130   : > { %v564_v40 = vpop.f32.mrf.mxu1 }
 0x131   : > { %v784_v37 = vpop.f32.mrf.mxu2  ;;  %v1038_v39 = vpop.f32.mrf.mxu3  ;;  %v565_v59 = vadd.f32 %v564_v40, %v3651_v25 }
 0x132   : > { %v849_v8 = vadd.f32 %v784_v37, %v563_v34  ;;  %v2863_v37 = vld [vmem:[%s3489_s11 + $0x4b0] ss:$2 sm:$0xff] }
 0x134   : > { %v1103_v41 = vadd.f32 %v1038_v39, %v849_v8  ;;  %v1294_v48 = vpop.f32.mrf.mxu0  ;;  %v2864_v39 = vld [vmem:[%s3489_s11 + $0x4c0] ss:$2 sm:$0xff] }
 0x135   : > { %v2960_v8 = vld [vmem:[%s3489_s11 + $0x4b2] ss:$2 sm:$0xff]  ;;  %v248_v63 = vpack.c.bf16 %v2864_v39, %v2863_v37  ;;  %v3176_v37 = vld [vmem:[%s3489_s11 + $0x61] ss:$2 sm:$0xff] }
 0x136   : > { %v3821_v52 = vadd.f32 %v1292_v33, %v1103_v41  ;;  %v2961_v41 = vld [vmem:[%s3489_s11 + $0x4c2] ss:$2 sm:$0xff] }
 0x137   : > { %v696_v61 = vpack.c.bf16 %v2961_v41, %v2960_v8  ;;  %v3224_v8 = vld [vmem:[%s3489_s11 + $0x52] ss:$2 sm:$0xff]  ;;  %v3225_v41 = vld [vmem:[%s3489_s11 + $0x62] ss:$2 sm:$0xff] }
 0x138   : > { %v567_v12 = vpop.f32.mrf.mxu1 }
 0x139   : > { %v786_v18 = vpop.f32.mrf.mxu2  ;;  %v1040_v9 = vpop.f32.mrf.mxu3  ;;  %v568_v22 = vadd.f32 %v567_v12, %v3667_v38 }
 0x13a   : > { %v850_v42 = vadd.f32 %v786_v18, %v565_v59 }
 0x13b   : > { %2928 = vmatmul.msk.bf16.gmra.mxu1 %vm332_vm2, %v247_v10 }
 0x13c   : > { %v1104_v17 = vadd.f32 %v1040_v9, %v850_v42  ;;  %v1297_v19 = vpop.f32.mrf.mxu0  ;;  %v1204_v9 = vpack.c.bf16 %v3059_v53, %v3058_v46 }
 0x13e   : > { %2977 = vmatmul.msk.bf16.gmra.mxu2 %vm332_vm2, %v695_v13  ;;  %3026 = vmatmul.msk.bf16.gmra.mxu3 %vm332_vm2, %v949_v62  ;;  %v3832_v25 = vadd.f32 %v1294_v48, %v1104_v17  ;;  %v3009_v48 = vld [vmem:[%s3489_s11 + $0x4d8] ss:$2 sm:$0xff] }
 0x13f   : > { %3075 = vmatmul.msk.bf16.gmra.mxu0 %vm332_vm2, %v1203_v14  ;;  %v950_v18 = vpack.c.bf16 %v3010_v49, %v3009_v48 }
 0x140   : > { %v569_v32 = vpop.f32.mrf.mxu1 }
 0x141   : > { %v789_v28 = vpop.f32.mrf.mxu2  ;;  %v1043_v29 = vpop.f32.mrf.mxu3  ;;  %v570_v50 = vadd.f32 %v569_v32, %v3679_v45 }
 0x142   : > { %v851_v31 = vadd.f32 %v789_v28, %v568_v22  ;;  %v3077_v28 = vld [vmem:[%s3489_s11 + $0x2a] ss:$2 sm:$0xff] }
 0x144   : > { %v1105_v33 = vadd.f32 %v1043_v29, %v851_v31  ;;  %v1299_v34 = vpop.f32.mrf.mxu0  ;;  %v3078_v29 = vld [vmem:[%s3489_s11 + $0x3a] ss:$2 sm:$0xff] }
 0x145   : > { %v3126_v31 = vld [vmem:[%s3489_s11 + $0x50] ss:$2 sm:$0xff]  ;;  %v1443_v49 = vpack.c.bf16 %v3078_v29, %v3077_v28  ;;  %v3178_v28 = vld [vmem:[%s3489_s11 + $0xb1] ss:$2 sm:$0xff] }
 0x146   : > { %v3839_v40 = vadd.f32 %v1297_v19, %v1105_v33  ;;  %v3127_v33 = vld [vmem:[%s3489_s11 + $0x60] ss:$2 sm:$0xff] }
 0x147   : > { %v1697_v53 = vpack.c.bf16 %v3127_v33, %v3126_v31  ;;  %v3226_v31 = vld [vmem:[%s3489_s11 + $0xa2] ss:$2 sm:$0xff]  ;;  %v3227_v33 = vld [vmem:[%s3489_s11 + $0xb2] ss:$2 sm:$0xff] }
 0x148   : > { %v572_v60 = vpop.f32.mrf.mxu1 }
 0x149   : > { %v791_v38 = vpop.f32.mrf.mxu2  ;;  %v1045_v54 = vpop.f32.mrf.mxu3  ;;  %v573_v12 = vadd.f32 %v572_v60, %v3695_v58 }
 0x14a   : > { %v852_v59 = vadd.f32 %v791_v38, %v570_v50 }
 0x14b   : > { %2929 = vmatmul.msk.bf16.gmra.mxu1 %vm332_vm2, %v248_v63 }
 0x14c   : > { %v1106_v10 = vadd.f32 %v1045_v54, %v852_v59  ;;  %v1302_v42 = vpop.f32.mrf.mxu0  ;;  %v2205_v54 = vpack.c.bf16 %v3225_v41, %v3224_v8 }
 0x14e   : > { %2978 = vmatmul.msk.bf16.gmra.mxu2 %vm332_vm2, %v696_v61  ;;  %3027 = vmatmul.msk.bf16.gmra.mxu3 %vm332_vm2, %v950_v18  ;;  %v3850_v45 = vadd.f32 %v1299_v34, %v1106_v10  ;;  %v3175_v34 = vld [vmem:[%s3489_s11 + $0x51] ss:$2 sm:$0xff] }
 0x14f   : > { %3076 = vmatmul.msk.bf16.gmra.mxu0 %vm332_vm2, %v1204_v9  ;;  %v1951_v38 = vpack.c.bf16 %v3176_v37, %v3175_v34 }
 0x150   : > { %v574_v17 = vpop.f32.mrf.mxu1 }
 0x151   : > { %v794_v13 = vpop.f32.mrf.mxu2  ;;  %v1048_v62 = vpop.f32.mrf.mxu3  ;;  %v575_v39 = vadd.f32 %v574_v17, %v3707_v7 }
 0x152   : > { %v853_v14 = vadd.f32 %v794_v13, %v573_v12  ;;  %v3079_v13 = vld [vmem:[%s3489_s11 + $0x7a] ss:$2 sm:$0xff] }
 0x154   : > { %v1107_v19 = vadd.f32 %v1048_v62, %v853_v14  ;;  %v1304_v22 = vpop.f32.mrf.mxu0  ;;  %v3080_v62 = vld [vmem:[%s3489_s11 + $0x8a] ss:$2 sm:$0xff] }
 0x155   : > { %v3128_v14 = vld [vmem:[%s3489_s11 + $0xa0] ss:$2 sm:$0xff]  ;;  %v1444_v37 = vpack.c.bf16 %v3080_v62, %v3079_v13  ;;  %v3180_v13 = vld [vmem:[%s3489_s11 + $0x101] ss:$2 sm:$0xff] }
 0x156   : > { %v3857_v32 = vadd.f32 %v1302_v42, %v1107_v19  ;;  %v3129_v19 = vld [vmem:[%s3489_s11 + $0xb0] ss:$2 sm:$0xff] }
 0x157   : > { %v1698_v41 = vpack.c.bf16 %v3129_v19, %v3128_v14  ;;  %v3228_v14 = vld [vmem:[%s3489_s11 + $0xf2] ss:$2 sm:$0xff]  ;;  %v3229_v19 = vld [vmem:[%s3489_s11 + $0x102] ss:$2 sm:$0xff] }
 0x158   : > { %v577_v46 = vpop.f32.mrf.mxu1 }
 0x159   : > { %v796_v58 = vpop.f32.mrf.mxu2  ;;  %v1050_v48 = vpop.f32.mrf.mxu3  ;;  %v578_v60 = vadd.f32 %v577_v46, %v3619_v3 }
 0x15a   : > { %v854_v50 = vadd.f32 %v796_v58, %v575_v39 }
 0x15b   : > { %3110 = vmatmul.msk.bf16.vlgmr.msra.gmra.mxu1 %vm332_vm2, %v1443_v49 }
 0x15c   : > { %v1108_v63 = vadd.f32 %v1050_v48, %v854_v50  ;;  %v1307_v59 = vpop.f32.mrf.mxu0  ;;  %v2206_v48 = vpack.c.bf16 %v3227_v33, %v3226_v31 }
 0x15e   : > { %3159 = vmatmul.msk.bf16.vlgmr.msra.gmra.mxu2 %vm332_vm2, %v1697_v53  ;;  %3208 = vmatmul.msk.bf16.vlgmr.msra.gmra.mxu3 %vm332_vm2, %v1951_v38  ;;  %v3868_v7 = vadd.f32 %v1304_v22, %v1108_v63  ;;  %v3177_v22 = vld [vmem:[%s3489_s11 + $0xa1] ss:$2 sm:$0xff] }
 0x15f   : > { %3257 = vmatmul.msk.bf16.vlgmr.msra.gmra.mxu0 %vm332_vm2, %v2205_v54  ;;  %v1952_v58 = vpack.c.bf16 %v3178_v28, %v3177_v22 }
 0x160   : > { %v579_v10 = vpop.f32.mrf.mxu1 }
 0x161   : > { %v799_v61 = vpop.f32.mrf.mxu2  ;;  %v1053_v18 = vpop.f32.mrf.mxu3  ;;  %v580_v29 = vadd.f32 %v579_v10, %v3635_v15 }
 0x162   : > { %v855_v9 = vadd.f32 %v799_v61, %v578_v60  ;;  %v3081_v61 = vld [vmem:[%s3489_s11 + $0xca] ss:$2 sm:$0xff] }
 0x164   : > { %v1109_v42 = vadd.f32 %v1053_v18, %v855_v9  ;;  %v1309_v12 = vpop.f32.mrf.mxu0  ;;  %v3082_v18 = vld [vmem:[%s3489_s11 + $0xda] ss:$2 sm:$0xff] }
 0x165   : > { %v3130_v9 = vld [vmem:[%s3489_s11 + $0xf0] ss:$2 sm:$0xff]  ;;  %v1445_v28 = vpack.c.bf16 %v3082_v18, %v3081_v61  ;;  %v3182_v61 = vld [vmem:[%s3489_s11 + $0x151] ss:$2 sm:$0xff] }
 0x166   : > { %v3875_v17 = vadd.f32 %v1307_v59, %v1109_v42  ;;  %v3131_v42 = vld [vmem:[%s3489_s11 + $0x100] ss:$2 sm:$0xff] }
 0x167   : > { %v1699_v33 = vpack.c.bf16 %v3131_v42, %v3130_v9  ;;  %v3230_v9 = vld [vmem:[%s3489_s11 + $0x142] ss:$2 sm:$0xff]  ;;  %v3231_v42 = vld [vmem:[%s3489_s11 + $0x152] ss:$2 sm:$0xff] }
 0x168   : > { %v582_v8 = vpop.f32.mrf.mxu1 }
 0x169   : > { %v801_v3 = vpop.f32.mrf.mxu2  ;;  %v1055_v34 = vpop.f32.mrf.mxu3  ;;  %v583_v46 = vadd.f32 %v582_v8, %v3647_v23 }
 0x16a   : > { %v856_v39 = vadd.f32 %v801_v3, %v580_v29 }
 0x16b   : > { %3111 = vmatmul.msk.bf16.gmra.mxu1 %vm332_vm2, %v1444_v37 }
 0x16c   : > { %v1110_v49 = vadd.f32 %v1055_v34, %v856_v39  ;;  %v1312_v50 = vpop.f32.mrf.mxu0  ;;  %v2207_v34 = vpack.c.bf16 %v3229_v19, %v3228_v14 }
 0x16e   : > { %3160 = vmatmul.msk.bf16.gmra.mxu2 %vm332_vm2, %v1698_v41  ;;  %3209 = vmatmul.msk.bf16.gmra.mxu3 %vm332_vm2, %v1952_v58  ;;  %v3886_v15 = vadd.f32 %v1309_v12, %v1110_v49  ;;  %v3179_v12 = vld [vmem:[%s3489_s11 + $0xf1] ss:$2 sm:$0xff] }
 0x16f   : > { %3258 = vmatmul.msk.bf16.gmra.mxu0 %vm332_vm2, %v2206_v48  ;;  %v1953_v3 = vpack.c.bf16 %v3180_v13, %v3179_v12 }
 0x170   : > { %v584_v63 = vpop.f32.mrf.mxu1 }
 0x171   : > { %v804_v53 = vpop.f32.mrf.mxu2  ;;  %v1058_v38 = vpop.f32.mrf.mxu3  ;;  %v585_v62 = vadd.f32 %v584_v63, %v3663_v35 }
 0x172   : > { %v857_v54 = vadd.f32 %v804_v53, %v583_v46  ;;  %v3083_v53 = vld [vmem:[%s3489_s11 + $0x11a] ss:$2 sm:$0xff] }
 0x174   : > { %v1111_v59 = vadd.f32 %v1058_v38, %v857_v54  ;;  %v1314_v60 = vpop.f32.mrf.mxu0  ;;  %v3084_v38 = vld [vmem:[%s3489_s11 + $0x12a] ss:$2 sm:$0xff] }
 0x175   : > { %v3132_v54 = vld [vmem:[%s3489_s11 + $0x140] ss:$2 sm:$0xff]  ;;  %v1446_v13 = vpack.c.bf16 %v3084_v38, %v3083_v53  ;;  %v3184_v53 = vld [vmem:[%s3489_s11 + $0x1a1] ss:$2 sm:$0xff] }
 0x176   : > { %v3893_v10 = vadd.f32 %v1312_v50, %v1111_v59  ;;  %v3133_v59 = vld [vmem:[%s3489_s11 + $0x150] ss:$2 sm:$0xff] }
 0x177   : > { %v1700_v19 = vpack.c.bf16 %v3133_v59, %v3132_v54  ;;  %v3232_v54 = vld [vmem:[%s3489_s11 + $0x192] ss:$2 sm:$0xff]  ;;  %v3233_v59 = vld [vmem:[%s3489_s11 + $0x1a2] ss:$2 sm:$0xff] }
 0x178   : > { %v587_v31 = vpop.f32.mrf.mxu1 }
 0x179   : > { %v806_v23 = vpop.f32.mrf.mxu2  ;;  %v1060_v22 = vpop.f32.mrf.mxu3  ;;  %v588_v8 = vadd.f32 %v587_v31, %v3675_v43 }
 0x17a   : > { %v858_v29 = vadd.f32 %v806_v23, %v585_v62 }
 0x17b   : > { %3112 = vmatmul.msk.bf16.gmra.mxu1 %vm332_vm2, %v1445_v28 }
 0x17c   : > { %v1112_v37 = vadd.f32 %v1060_v22, %v858_v29  ;;  %v1317_v39 = vpop.f32.mrf.mxu0  ;;  %v2208_v22 = vpack.c.bf16 %v3231_v42, %v3230_v9 }
 0x17e   : > { %3161 = vmatmul.msk.bf16.gmra.mxu2 %vm332_vm2, %v1699_v33  ;;  %3210 = vmatmul.msk.bf16.gmra.mxu3 %vm332_vm2, %v1953_v3  ;;  %v3904_v35 = vadd.f32 %v1314_v60, %v1112_v37  ;;  %v3181_v60 = vld [vmem:[%s3489_s11 + $0x141] ss:$2 sm:$0xff] }
 0x17f   : > { %3259 = vmatmul.msk.bf16.gmra.mxu0 %vm332_vm2, %v2207_v34  ;;  %v1954_v23 = vpack.c.bf16 %v3182_v61, %v3181_v60 }
 0x180   : > { %v589_v49 = vpop.f32.mrf.mxu1 }
 0x181   : > { %v809_v41 = vpop.f32.mrf.mxu2  ;;  %v1063_v58 = vpop.f32.mrf.mxu3  ;;  %v590_v18 = vadd.f32 %v589_v49, %v3691_v55 }
 0x182   : > { %v859_v48 = vadd.f32 %v809_v41, %v588_v8  ;;  %v3085_v41 = vld [vmem:[%s3489_s11 + $0x16a] ss:$2 sm:$0xff] }
 0x184   : > { %v1113_v50 = vadd.f32 %v1063_v58, %v859_v48  ;;  %v1319_v46 = vpop.f32.mrf.mxu0  ;;  %v3086_v58 = vld [vmem:[%s3489_s11 + $0x17a] ss:$2 sm:$0xff] }
 0x185   : > { %v3134_v48 = vld [vmem:[%s3489_s11 + $0x190] ss:$2 sm:$0xff]  ;;  %v1447_v61 = vpack.c.bf16 %v3086_v58, %v3085_v41  ;;  %v3186_v41 = vld [vmem:[%s3489_s11 + $0x1f1] ss:$2 sm:$0xff] }
 0x186   : > { %v3911_v63 = vadd.f32 %v1317_v39, %v1113_v50  ;;  %v3135_v50 = vld [vmem:[%s3489_s11 + $0x1a0] ss:$2 sm:$0xff] }
 0x187   : > { %v1701_v42 = vpack.c.bf16 %v3135_v50, %v3134_v48  ;;  %v3234_v48 = vld [vmem:[%s3489_s11 + $0x1e2] ss:$2 sm:$0xff]  ;;  %v3235_v50 = vld [vmem:[%s3489_s11 + $0x1f2] ss:$2 sm:$0xff] }
 0x188   : > { %v592_v14 = vpop.f32.mrf.mxu1 }
 0x189   : > { %v811_v43 = vpop.f32.mrf.mxu2  ;;  %v1065_v12 = vpop.f32.mrf.mxu3  ;;  %v593_v31 = vadd.f32 %v592_v14, %v3703_v0 }
 0x18a   : > { %v860_v62 = vadd.f32 %v811_v43, %v590_v18 }
 0x18b   : > { %3113 = vmatmul.msk.bf16.gmra.mxu1 %vm332_vm2, %v1446_v13 }
 0x18c   : > { %v1114_v28 = vadd.f32 %v1065_v12, %v860_v62  ;;  %v1322_v29 = vpop.f32.mrf.mxu0  ;;  %v2209_v12 = vpack.c.bf16 %v3233_v59, %v3232_v54 }
 0x18e   : > { %3162 = vmatmul.msk.bf16.gmra.mxu2 %vm332_vm2, %v1700_v19  ;;  %3211 = vmatmul.msk.bf16.gmra.mxu3 %vm332_vm2, %v1954_v23  ;;  %v3922_v55 = vadd.f32 %v1319_v46, %v1114_v28  ;;  %v3183_v46 = vld [vmem:[%s3489_s11 + $0x191] ss:$2 sm:$0xff] }
 0x18f   : > { %3260 = vmatmul.msk.bf16.gmra.mxu0 %vm332_vm2, %v2208_v22  ;;  %v1955_v43 = vpack.c.bf16 %v3184_v53, %v3183_v46 }
 0x190   : > { %v594_v37 = vpop.f32.mrf.mxu1 }
 0x191   : > { %v814_v33 = vpop.f32.mrf.mxu2  ;;  %v1068_v3 = vpop.f32.mrf.mxu3  ;;  %v595_v38 = vadd.f32 %v594_v37, %v3719_v20 }
 0x192   : > { %v861_v34 = vadd.f32 %v814_v33, %v593_v31  ;;  %v3087_v33 = vld [vmem:[%s3489_s11 + $0x1ba] ss:$2 sm:$0xff] }
 0x194   : > { %v1115_v39 = vadd.f32 %v1068_v3, %v861_v34  ;;  %v1324_v8 = vpop.f32.mrf.mxu0  ;;  %v3088_v3 = vld [vmem:[%s3489_s11 + $0x1ca] ss:$2 sm:$0xff] }
 0x195   : > { %v3136_v34 = vld [vmem:[%s3489_s11 + $0x1e0] ss:$2 sm:$0xff]  ;;  %v1448_v53 = vpack.c.bf16 %v3088_v3, %v3087_v33  ;;  %v3188_v33 = vld [vmem:[%s3489_s11 + $0x241] ss:$2 sm:$0xff] }
 0x196   : > { %v3929_v49 = vadd.f32 %v1322_v29, %v1115_v39  ;;  %v3137_v39 = vld [vmem:[%s3489_s11 + $0x1f0] ss:$2 sm:$0xff] }
 0x197   : > { %v1702_v59 = vpack.c.bf16 %v3137_v39, %v3136_v34  ;;  %v3236_v34 = vld [vmem:[%s3489_s11 + $0x232] ss:$2 sm:$0xff]  ;;  %v3237_v39 = vld [vmem:[%s3489_s11 + $0x242] ss:$2 sm:$0xff] }
 0x198   : > { %v597_v9 = vpop.f32.mrf.mxu1 }
 0x199   : > { %v816_v0 = vpop.f32.mrf.mxu2  ;;  %v1070_v60 = vpop.f32.mrf.mxu3  ;;  %v598_v14 = vadd.f32 %v597_v9, %v3621_v4 }
 0x19a   : > { %v862_v18 = vadd.f32 %v816_v0, %v595_v38 }
 0x19b   : > { %3114 = vmatmul.msk.bf16.gmra.mxu1 %vm332_vm2, %v1447_v61 }
 0x19c   : > { %v1116_v13 = vadd.f32 %v1070_v60, %v862_v18  ;;  %v1327_v62 = vpop.f32.mrf.mxu0  ;;  %v2210_v60 = vpack.c.bf16 %v3235_v50, %v3234_v48 }
 0x19e   : > { %3163 = vmatmul.msk.bf16.gmra.mxu2 %vm332_vm2, %v1701_v42  ;;  %3212 = vmatmul.msk.bf16.gmra.mxu3 %vm332_vm2, %v1955_v43  ;;  %v3940_v20 = vadd.f32 %v1324_v8, %v1116_v13  ;;  %v3185_v8 = vld [vmem:[%s3489_s11 + $0x1e1] ss:$2 sm:$0xff] }
 0x19f   : > { %3261 = vmatmul.msk.bf16.gmra.mxu0 %vm332_vm2, %v2209_v12  ;;  %v1956_v0 = vpack.c.bf16 %v3186_v41, %v3185_v8 }
 0x1a0   : > { %v599_v28 = vpop.f32.mrf.mxu1 }
 0x1a1   : > { %v819_v19 = vpop.f32.mrf.mxu2  ;;  %v1073_v23 = vpop.f32.mrf.mxu3  ;;  %v600_v58 = vadd.f32 %v599_v28, %v3637_v16 }
 0x1a2   : > { %v863_v22 = vadd.f32 %v819_v19, %v598_v14  ;;  %v3089_v19 = vld [vmem:[%s3489_s11 + $0x20a] ss:$2 sm:$0xff] }
 0x1a4   : > { %v1117_v29 = vadd.f32 %v1073_v23, %v863_v22  ;;  %v1329_v31 = vpop.f32.mrf.mxu0  ;;  %v3090_v23 = vld [vmem:[%s3489_s11 + $0x21a] ss:$2 sm:$0xff] }
 0x1a5   : > { %v3138_v22 = vld [vmem:[%s3489_s11 + $0x230] ss:$2 sm:$0xff]  ;;  %v1449_v41 = vpack.c.bf16 %v3090_v23, %v3089_v19  ;;  %v3190_v19 = vld [vmem:[%s3489_s11 + $0x291] ss:$2 sm:$0xff] }
 0x1a6   : > { %v3947_v37 = vadd.f32 %v1327_v62, %v1117_v29  ;;  %v3139_v29 = vld [vmem:[%s3489_s11 + $0x240] ss:$2 sm:$0xff] }
 0x1a7   : > { %v1703_v50 = vpack.c.bf16 %v3139_v29, %v3138_v22  ;;  %v3238_v22 = vld [vmem:[%s3489_s11 + $0x282] ss:$2 sm:$0xff]  ;;  %v3239_v29 = vld [vmem:[%s3489_s11 + $0x292] ss:$2 sm:$0xff] }
 0x1a8   : > { %v602_v54 = vpop.f32.mrf.mxu1 }
 0x1a9   : > { %v821_v4 = vpop.f32.mrf.mxu2  ;;  %v1075_v46 = vpop.f32.mrf.mxu3  ;;  %v603_v9 = vadd.f32 %v602_v54, %v3649_v24 }
 0x1aa   : > { %v864_v38 = vadd.f32 %v821_v4, %v600_v58 }
 0x1ab   : > { %3115 = vmatmul.msk.bf16.gmra.mxu1 %vm332_vm2, %v1448_v53 }
 0x1ac   : > { %v1118_v61 = vadd.f32 %v1075_v46, %v864_v38  ;;  %v1332_v18 = vpop.f32.mrf.mxu0  ;;  %v2211_v46 = vpack.c.bf16 %v3237_v39, %v3236_v34 }
 0x1ae   : > { %3164 = vmatmul.msk.bf16.gmra.mxu2 %vm332_vm2, %v1702_v59  ;;  %3213 = vmatmul.msk.bf16.gmra.mxu3 %vm332_vm2, %v1956_v0  ;;  %v3958_v16 = vadd.f32 %v1329_v31, %v1118_v61  ;;  %v3187_v31 = vld [vmem:[%s3489_s11 + $0x231] ss:$2 sm:$0xff] }
 0x1af   : > { %3262 = vmatmul.msk.bf16.gmra.mxu0 %vm332_vm2, %v2210_v60  ;;  %v1957_v4 = vpack.c.bf16 %v3188_v33, %v3187_v31 }
 0x1b0   : > { %v604_v13 = vpop.f32.mrf.mxu1 }
 0x1b1   : > { %v824_v42 = vpop.f32.mrf.mxu2  ;;  %v1078_v43 = vpop.f32.mrf.mxu3  ;;  %v605_v3 = vadd.f32 %v604_v13, %v3665_v36 }
 0x1b2   : > { %v865_v12 = vadd.f32 %v824_v42, %v603_v9  ;;  %v3091_v42 = vld [vmem:[%s3489_s11 + $0x25a] ss:$2 sm:$0xff] }
 0x1b4   : > { %v1119_v62 = vadd.f32 %v1078_v43, %v865_v12  ;;  %v1334_v14 = vpop.f32.mrf.mxu0  ;;  %v3092_v43 = vld [vmem:[%s3489_s11 + $0x26a] ss:$2 sm:$0xff] }
 0x1b5   : > { %v3140_v12 = vld [vmem:[%s3489_s11 + $0x280] ss:$2 sm:$0xff]  ;;  %v1450_v33 = vpack.c.bf16 %v3092_v43, %v3091_v42  ;;  %v3192_v42 = vld [vmem:[%s3489_s11 + $0x2e1] ss:$2 sm:$0xff] }
 0x1b6   : > { %v3965_v28 = vadd.f32 %v1332_v18, %v1119_v62  ;;  %v3141_v62 = vld [vmem:[%s3489_s11 + $0x290] ss:$2 sm:$0xff] }
 0x1b7   : > { %v1704_v39 = vpack.c.bf16 %v3141_v62, %v3140_v12  ;;  %v3240_v12 = vld [vmem:[%s3489_s11 + $0x2d2] ss:$2 sm:$0xff]  ;;  %v3241_v62 = vld [vmem:[%s3489_s11 + $0x2e2] ss:$2 sm:$0xff] }
 0x1b8   : > { %v607_v48 = vpop.f32.mrf.mxu1 }
 0x1b9   : > { %v826_v24 = vpop.f32.mrf.mxu2  ;;  %v1080_v8 = vpop.f32.mrf.mxu3  ;;  %v608_v54 = vadd.f32 %v607_v48, %v3677_v44 }
 0x1ba   : > { %v866_v58 = vadd.f32 %v826_v24, %v605_v3 }
 0x1bb   : > { %3116 = vmatmul.msk.bf16.gmra.mxu1 %vm332_vm2, %v1449_v41 }
 0x1bc   : > { %v1120_v53 = vadd.f32 %v1080_v8, %v866_v58  ;;  %v1337_v38 = vpop.f32.mrf.mxu0  ;;  %v2212_v8 = vpack.c.bf16 %v3239_v29, %v3238_v22 }
 0x1be   : > { %3165 = vmatmul.msk.bf16.gmra.mxu2 %vm332_vm2, %v1703_v50  ;;  %3214 = vmatmul.msk.bf16.gmra.mxu3 %vm332_vm2, %v1957_v4  ;;  %v3976_v36 = vadd.f32 %v1334_v14, %v1120_v53  ;;  %v3189_v14 = vld [vmem:[%s3489_s11 + $0x281] ss:$2 sm:$0xff] }
 0x1bf   : > { %3263 = vmatmul.msk.bf16.gmra.mxu0 %vm332_vm2, %v2211_v46  ;;  %v1958_v24 = vpack.c.bf16 %v3190_v19, %v3189_v14 }
 0x1c0   : > { %v609_v61 = vpop.f32.mrf.mxu1 }
 0x1c1   : > { %v829_v59 = vpop.f32.mrf.mxu2  ;;  %v1083_v0 = vpop.f32.mrf.mxu3  ;;  %v610_v23 = vadd.f32 %v609_v61, %v3693_v56 }
 0x1c2   : > { %v867_v60 = vadd.f32 %v829_v59, %v608_v54  ;;  %v3093_v59 = vld [vmem:[%s3489_s11 + $0x2aa] ss:$2 sm:$0xff] }
 0x1c4   : > { %v1121_v18 = vadd.f32 %v1083_v0, %v867_v60  ;;  %v1339_v9 = vpop.f32.mrf.mxu0  ;;  %v3094_v0 = vld [vmem:[%s3489_s11 + $0x2ba] ss:$2 sm:$0xff] }
 0x1c5   : > { %v3142_v60 = vld [vmem:[%s3489_s11 + $0x2d0] ss:$2 sm:$0xff]  ;;  %v1451_v19 = vpack.c.bf16 %v3094_v0, %v3093_v59  ;;  %v3194_v59 = vld [vmem:[%s3489_s11 + $0x331] ss:$2 sm:$0xff] }
 0x1c6   : > { %v3983_v13 = vadd.f32 %v1337_v38, %v1121_v18  ;;  %v3143_v18 = vld [vmem:[%s3489_s11 + $0x2e0] ss:$2 sm:$0xff] }
 0x1c7   : > { %v1705_v29 = vpack.c.bf16 %v3143_v18, %v3142_v60  ;;  %v3242_v18 = vld [vmem:[%s3489_s11 + $0x322] ss:$2 sm:$0xff] }
 0x1c8   : > { %v612_v34 = vpop.f32.mrf.mxu1 }
 0x1c9   : > { %v831_v44 = vpop.f32.mrf.mxu2  ;;  %v1085_v31 = vpop.f32.mrf.mxu3  ;;  %v613_v48 = vadd.f32 %v612_v34, %v3705_v1 }
 0x1ca   : > { %v868_v3 = vadd.f32 %v831_v44, %v610_v23 }
 0x1cb   : > { %3117 = vmatmul.msk.bf16.gmra.mxu1 %vm332_vm2, %v1450_v33 }
 0x1cc   : > { %v1122_v41 = vadd.f32 %v1085_v31, %v868_v3  ;;  %v1342_v58 = vpop.f32.mrf.mxu0  ;;  %v2213_v31 = vpack.c.bf16 %v3241_v62, %v3240_v12 }
 0x1ce   : > { %3166 = vmatmul.msk.bf16.gmra.mxu2 %vm332_vm2, %v1704_v39  ;;  %3215 = vmatmul.msk.bf16.gmra.mxu3 %vm332_vm2, %v1958_v24  ;;  %v3994_v56 = vadd.f32 %v1339_v9, %v1122_v41  ;;  %v3191_v9 = vld [vmem:[%s3489_s11 + $0x2d1] ss:$2 sm:$0xff] }
 0x1cf   : > { %3264 = vmatmul.msk.bf16.gmra.mxu0 %vm332_vm2, %v2212_v8  ;;  %v1959_v44 = vpack.c.bf16 %v3192_v42, %v3191_v9  ;;  %v3243_v9 = vld [vmem:[%s3489_s11 + $0x332] ss:$2 sm:$0xff] }
 0x1d0   : > { %v614_v53 = vpop.f32.mrf.mxu1 }
 0x1d1   : > { %v834_v50 = vpop.f32.mrf.mxu2  ;;  %v1088_v4 = vpop.f32.mrf.mxu3  ;;  %v615_v43 = vadd.f32 %v614_v53, %v3721_v21  ;;  %v3096_v53 = vld [vmem:[%s3489_s11 + $0x30a] ss:$2 sm:$0xff] }
 0x1d2   : > { %v869_v46 = vadd.f32 %v834_v50, %v613_v48  ;;  %v4019_v48 = vld [vmem:[%s4275_s2] ss:$0 sm:$0xff] }
 0x1d4   : > { %v1123_v38 = vadd.f32 %v1088_v4, %v869_v46  ;;  %v1344_v54 = vpop.f32.mrf.mxu0  ;;  %v3095_v46 = vld [vmem:[%s3489_s11 + $0x2fa] ss:$2 sm:$0xff] }
 0x1d5   : > { %v1452_v12 = vpack.c.bf16 %v3096_v53, %v3095_v46 }
 0x1d6   : > { %v4001_v61 = vadd.f32 %v1342_v58, %v1123_v38  ;;  %v3144_v38 = vld [vmem:[%s3489_s11 + $0x320] ss:$2 sm:$0xff] }
 0x1d8   : > { %v1521_v22 = vpop.f32.mrf.mxu1 }
 0x1d9   : > { %v836_v1 = vpop.f32.mrf.mxu2  ;;  %v1090_v14 = vpop.f32.mrf.mxu3  ;;  %v1601_v34 = vadd.f32 %v1521_v22, %v3732_v51  ;;  %v3145_v51 = vld [vmem:[%s3489_s11 + $0x330] ss:$2 sm:$0xff]  ;;  %v2214_v22 = vpack.c.bf16 %v3243_v9, %v3242_v18 }
 0x1da   : > { %v870_v23 = vadd.f32 %v836_v1, %v615_v43 }
 0x1db   : > { %3118 = vmatmul.msk.bf16.gmra.mxu1 %vm332_vm2, %v1451_v19  ;;  %v1706_v19 = vpack.c.bf16 %v3145_v51, %v3144_v38  ;;  %v3097_v51 = vld [vmem:[%s3489_s11 + $0x34a] ss:$2 sm:$0xff] }
 0x1dc   : > { %v1124_v33 = vadd.f32 %v1090_v14, %v870_v23  ;;  %v2283_v3 = vpop.f32.mrf.mxu0 }
 0x1de   : > { %3167 = vmatmul.msk.bf16.gmra.mxu2 %vm332_vm2, %v1705_v29  ;;  %3216 = vmatmul.msk.bf16.gmra.mxu3 %vm332_vm2, %v1959_v44  ;;  %v4012_v21 = vadd.f32 %v1344_v54, %v1124_v33  ;;  %v3193_v54 = vld [vmem:[%s3489_s11 + $0x321] ss:$2 sm:$0xff] }
 0x1df   : > { %3265 = vmatmul.msk.bf16.gmra.mxu0 %vm332_vm2, %v2213_v31  ;;  %v1960_v23 = vpack.c.bf16 %v3194_v59, %v3193_v54  ;;  %v3098_v54 = vld [vmem:[%s3489_s11 + $0x35a] ss:$2 sm:$0xff] }
 0x1e0   : > { %v1523_v41 = vpop.f32.mrf.mxu1  ;;  %v3146_v59 = vld [vmem:[%s3489_s11 + $0x370] ss:$2 sm:$0xff] }
 0x1e1   : > { %v1775_v39 = vpop.f32.mrf.mxu2  ;;  %v2029_v24 = vpop.f32.mrf.mxu3  ;;  %v1602_v60 = vadd.f32 %v1523_v41, %v3743_v27 }
 0x1e2   : > { %v1855_v8 = vadd.f32 %v1775_v39, %v1601_v34 }
 0x1e4   : > { %v2109_v58 = vadd.f32 %v2029_v24, %v1855_v8  ;;  %v2285_v50 = vpop.f32.mrf.mxu0 }
 0x1e6   : > { %v2363_v4 = vadd.f32 %v2283_v3, %v2109_v58 }
 0x1e8   : > { %v2399_v0 = vadd.f32 %v4019_v48, %v2363_v4  ;;  %v1526_v14 = vpop.f32.mrf.mxu1 }
 0x1e9   : > { %v1777_v42 = vpop.f32.mrf.mxu2  ;;  %v2031_v43 = vpop.f32.mrf.mxu3  ;;  %v1603_v34 = vadd.f32 %v1526_v14, %v3750_v2  ;;  %v3196_v2 = vld [vmem:[%s3489_s11 + $0x381] ss:$2 sm:$0xff] }
 0x1ea   : > { %v2431_v62 = vmax.f32 %v2399_v0, 0.0  ;;  %v1856_v1 = vadd.f32 %v1777_v42, %v1602_v60  ;;  %v3147_v0 = vld [vmem:[%s3489_s11 + $0x380] ss:$2 sm:$0xff]  ;;  %v3195_v60 = vld [vmem:[%s3489_s11 + $0x371] ss:$2 sm:$0xff] }
 0x1eb   : > { %3119 = vmatmul.msk.bf16.gmra.mxu1 %vm332_vm2, %v1452_v12  ;;  %v3244_v42 = vld [vmem:[%s3489_s11 + $0x372] ss:$2 sm:$0xff] }
 0x1ec   : > { %v2463_v29 = vmin.f32 %v2431_v62, 6.0  ;;  %v2110_v44 = vadd.f32 %v2031_v43, %v1856_v1  ;;  %v2288_v31 = vpop.f32.mrf.mxu0  ;;  %v3245_v43 = vld [vmem:[%s3489_s11 + $0x382] ss:$2 sm:$0xff]  ;;  %v1453_v1 = vpack.c.bf16 %v3098_v54, %v3097_v51 }
 0x1ed   : > { %v3099_v54 = vld [vmem:[%s3489_s11 + $0x39a] ss:$2 sm:$0xff] }
 0x1ee   : > { %v2495_v27 = vpack.c.bf16 %v2463_v29, %v2463_v29  ;;  %v2364_v33 = vadd.f32 %v2285_v50, %v2110_v44  ;;  %3168 = vmatmul.msk.bf16.gmra.mxu2 %vm332_vm2, %v1706_v19  ;;  %3217 = vmatmul.msk.bf16.gmra.mxu3 %vm332_vm2, %v1960_v23  ;;  %v1961_v29 = vpack.c.bf16 %v3196_v2, %v3195_v60  ;;  %v3149_v60 = vld [vmem:[%s3489_s11 + $0x3d0] ss:$2 sm:$0xff]  ;;  %v3197_v2 = vld [vmem:[%s3489_s11 + $0x3c1] ss:$2 sm:$0xff] }
 0x1ef   : > { %3266 = vmatmul.msk.bf16.gmra.mxu0 %vm332_vm2, %v2214_v22  ;;  %v1707_v22 = vpack.c.bf16 %v3147_v0, %v3146_v59  ;;  %v2215_v44 = vpack.c.bf16 %v3245_v43, %v3244_v42  ;;  %v3100_v59 = vld [vmem:[%s3489_s11 + $0x3aa] ss:$2 sm:$0xff] }
 0x1f0   : > { %2528 = vst.msk [vmem:[%s4038_s6] sm:$0xf] %vm2527_vm3, %v2495_v27  ;;  %v2400_v3 = vadd.f32 %v4019_v48, %v2364_v33  ;;  %v1528_v58 = vpop.f32.mrf.mxu1  ;;  %v3148_v0 = vld [vmem:[%s3489_s11 + $0x3c0] ss:$2 sm:$0xff] }
 0x1f1   : > { %v1780_v39 = vpop.f32.mrf.mxu2  ;;  %v2034_v24 = vpop.f32.mrf.mxu3  ;;  %v1604_v9 = vadd.f32 %v1528_v58, %v3761_v11  ;;  %v3246_v42 = vld [vmem:[%s3489_s11 + $0x3c2] ss:$2 sm:$0xff]  ;;  %v3247_v43 = vld [vmem:[%s3489_s11 + $0x3d2] ss:$2 sm:$0xff] }
 0x1f2   : > { %v2432_v8 = vmax.f32 %v2400_v3, 0.0  ;;  %v1857_v41 = vadd.f32 %v1780_v39, %v1603_v34 }
 0x1f4   : > { %v2464_v50 = vmin.f32 %v2432_v8, 6.0  ;;  %v2111_v4 = vadd.f32 %v2034_v24, %v1857_v41  ;;  %v2290_v46 = vpop.f32.mrf.mxu0 }
 0x1f6   : > { %v2496_v53 = vpack.c.bf16 %v2464_v50, %v2464_v50  ;;  %v2365_v38 = vadd.f32 %v2288_v31, %v2111_v4 }
 0x1f8   : > { %2529 = vst.msk [vmem:[%s4038_s6 + $0x4] sm:$0xf] %vm2527_vm3, %v2496_v53  ;;  %v2401_v18 = vadd.f32 %v4019_v48, %v2365_v38  ;;  %v1531_v23 = vpop.f32.mrf.mxu1 }
 0x1f9   : > { %v1782_v12 = vpop.f32.mrf.mxu2  ;;  %v2036_v62 = vpop.f32.mrf.mxu3  ;;  %v1605_v39 = vadd.f32 %v1531_v23, %v3768_v30  ;;  %v3198_v30 = vld [vmem:[%s3489_s11 + $0x3d1] ss:$2 sm:$0xff] }
 0x1fa   : > { %v2433_v14 = vmax.f32 %v2401_v18, 0.0  ;;  %v1858_v19 = vadd.f32 %v1782_v12, %v1604_v9 }
 0x1fb   : > { %3120 = vmatmul.msk.bf16.gmra.mxu1 %vm332_vm2, %v1453_v1  ;;  %v1454_v1 = vpack.c.bf16 %v3100_v59, %v3099_v54  ;;  %v3102_v54 = vld [vmem:[%s3489_s11 + $0x3fa] ss:$2 sm:$0xff] }
 0x1fc   : > { %v2465_v31 = vmin.f32 %v2433_v14, 6.0  ;;  %v2112_v27 = vadd.f32 %v2036_v62, %v1858_v19  ;;  %v2293_v33 = vpop.f32.mrf.mxu0  ;;  %v3150_v59 = vld [vmem:[%s3489_s11 + $0x410] ss:$2 sm:$0xff] }
 0x1fe   : > { %v2497_v3 = vpack.c.bf16 %v2465_v31, %v2465_v31  ;;  %v2366_v34 = vadd.f32 %v2290_v46, %v2112_v27  ;;  %3169 = vmatmul.msk.bf16.gmra.mxu2 %vm332_vm2, %v1707_v22  ;;  %3218 = vmatmul.msk.bf16.gmra.mxu3 %vm332_vm2, %v1961_v29  ;;  %v1708_v22 = vpack.c.bf16 %v3149_v60, %v3148_v0  ;;  %v3151_v0 = vld [vmem:[%s3489_s11 + $0x420] ss:$2 sm:$0xff]  ;;  %v3199_v60 = vld [vmem:[%s3489_s11 + $0x411] ss:$2 sm:$0xff] }
 0x1ff   : > { %3267 = vmatmul.msk.bf16.gmra.mxu0 %vm332_vm2, %v2215_v44  ;;  %v1962_v29 = vpack.c.bf16 %v3198_v30, %v3197_v2  ;;  %v2216_v44 = vpack.c.bf16 %v3247_v43, %v3246_v42 }
 0x200   : > { %2530 = vst.msk [vmem:[%s4038_s6 + $0x8] sm:$0xf] %vm2527_vm3, %v2497_v3  ;;  %v2402_v11 = vadd.f32 %v4019_v48, %v2366_v34  ;;  %v1533_v50 = vpop.f32.mrf.mxu1 }
 0x201   : > { %v1785_v24 = vpop.f32.mrf.mxu2  ;;  %v2039_v8 = vpop.f32.mrf.mxu3  ;;  %v1606_v9 = vadd.f32 %v1533_v50, %v3779_v57 }
 0x202   : > { %v2434_v41 = vmax.f32 %v2402_v11, 0.0  ;;  %v1859_v58 = vadd.f32 %v1785_v24, %v1605_v39 }
 0x204   : > { %v2466_v4 = vmin.f32 %v2434_v41, 6.0  ;;  %v2113_v46 = vadd.f32 %v2039_v8, %v1859_v58  ;;  %v2295_v53 = vpop.f32.mrf.mxu0 }
 0x206   : > { %v2498_v38 = vpack.c.bf16 %v2466_v4, %v2466_v4  ;;  %v2367_v51 = vadd.f32 %v2293_v33, %v2113_v46 }
 0x208   : > { %2531 = vst.msk [vmem:[%s4038_s6 + $0xc] sm:$0xf] %vm2527_vm3, %v2498_v38  ;;  %v2403_v18 = vadd.f32 %v4019_v48, %v2367_v51  ;;  %v1536_v23 = vpop.f32.mrf.mxu1  ;;  %v3101_v51 = vld [vmem:[%s3489_s11 + $0x3ea] ss:$2 sm:$0xff] }
 0x209   : > { %v1787_v12 = vpop.f32.mrf.mxu2  ;;  %v2041_v62 = vpop.f32.mrf.mxu3  ;;  %v1607_v11 = vadd.f32 %v1536_v23, %v3786_v6  ;;  %v3200_v6 = vld [vmem:[%s3489_s11 + $0x421] ss:$2 sm:$0xff] }
 0x20a   : > { %v2435_v14 = vmax.f32 %v2403_v18, 0.0  ;;  %v1860_v19 = vadd.f32 %v1787_v12, %v1606_v9  ;;  %v3248_v18 = vld [vmem:[%s3489_s11 + $0x412] ss:$2 sm:$0xff]  ;;  %v3249_v9 = vld [vmem:[%s3489_s11 + $0x422] ss:$2 sm:$0xff]  ;;  %v1455_v12 = vpack.c.bf16 %v3102_v54, %v3101_v51  ;;  %v1963_v23 = vpack.c.bf16 %v3200_v6, %v3199_v60 }
 0x20b   : > { %3121 = vmatmul.msk.bf16.gmra.mxu1 %vm332_vm2, %v1454_v1  ;;  %v3153_v51 = vld [vmem:[%s3489_s11 + $0x470] ss:$2 sm:$0xff]  ;;  %v3201_v54 = vld [vmem:[%s3489_s11 + $0x461] ss:$2 sm:$0xff] }
 0x20c   : > { %v2467_v31 = vmin.f32 %v2435_v14, 6.0  ;;  %v2114_v27 = vadd.f32 %v2041_v62, %v1860_v19  ;;  %v2298_v33 = vpop.f32.mrf.mxu0  ;;  %v1709_v19 = vpack.c.bf16 %v3151_v0, %v3150_v59  ;;  %v3250_v60 = vld [vmem:[%s3489_s11 + $0x462] ss:$2 sm:$0xff]  ;;  %v3251_v6 = vld [vmem:[%s3489_s11 + $0x472] ss:$2 sm:$0xff] }
 0x20e   : > { %v2499_v3 = vpack.c.bf16 %v2467_v31, %v2467_v31  ;;  %v2368_v34 = vadd.f32 %v2295_v53, %v2114_v27  ;;  %3170 = vmatmul.msk.bf16.gmra.mxu2 %vm332_vm2, %v1708_v22  ;;  %3219 = vmatmul.msk.bf16.gmra.mxu3 %vm332_vm2, %v1962_v29  ;;  %v2217_v22 = vpack.c.bf16 %v3249_v9, %v3248_v18 }
 0x20f   : > { %3268 = vmatmul.msk.bf16.gmra.mxu0 %vm332_vm2, %v2216_v44 }
 0x210   : > { %2532 = vst.msk [vmem:[%s4038_s6 + $0x10] sm:$0xf] %vm2527_vm3, %v2499_v3  ;;  %v2404_v57 = vadd.f32 %v4019_v48, %v2368_v34  ;;  %v1538_v58 = vpop.f32.mrf.mxu1 }
 0x211   : > { %v1790_v39 = vpop.f32.mrf.mxu2  ;;  %v2044_v24 = vpop.f32.mrf.mxu3  ;;  %v1608_v30 = vadd.f32 %v1538_v58, %v3796_v47 }
 0x212   : > { %v2436_v8 = vmax.f32 %v2404_v57, 0.0  ;;  %v1861_v41 = vadd.f32 %v1790_v39, %v1607_v11 }
 0x214   : > { %v2468_v50 = vmin.f32 %v2436_v8, 6.0  ;;  %v2115_v4 = vadd.f32 %v2044_v24, %v1861_v41  ;;  %v2300_v46 = vpop.f32.mrf.mxu0 }
 0x216   : > { %v2500_v53 = vpack.c.bf16 %v2468_v50, %v2468_v50  ;;  %v2369_v38 = vadd.f32 %v2298_v33, %v2115_v4 }
 0x218   : > { %2533 = vst.msk [vmem:[%s4038_s6 + $0x14] sm:$0xf] %vm2527_vm3, %v2500_v53  ;;  %v2405_v2 = vadd.f32 %v4019_v48, %v2369_v38  ;;  %v1541_v14 = vpop.f32.mrf.mxu1  ;;  %v3104_v53 = vld [vmem:[%s3489_s11 + $0x44a] ss:$2 sm:$0xff] }
 0x219   : > { %v1792_v42 = vpop.f32.mrf.mxu2  ;;  %v2046_v43 = vpop.f32.mrf.mxu3  ;;  %v1609_v3 = vadd.f32 %v1541_v14, %v3803_v26  ;;  %v3152_v38 = vld [vmem:[%s3489_s11 + $0x460] ss:$2 sm:$0xff]  ;;  %v3202_v26 = vld [vmem:[%s3489_s11 + $0x471] ss:$2 sm:$0xff] }
 0x21a   : > { %v2437_v62 = vmax.f32 %v2405_v2, 0.0  ;;  %v1862_v1 = vadd.f32 %v1792_v42, %v1608_v30 }
 0x21b   : > { %3122 = vmatmul.msk.bf16.gmra.mxu1 %vm332_vm2, %v1455_v12  ;;  %v1710_v12 = vpack.c.bf16 %v3153_v51, %v3152_v38  ;;  %v3252_v38 = vld [vmem:[%s3489_s11 + $0x4b2] ss:$2 sm:$0xff]  ;;  %v3253_v51 = vld [vmem:[%s3489_s11 + $0x4c2] ss:$2 sm:$0xff] }
 0x21c   : > { %v2469_v29 = vmin.f32 %v2437_v62, 6.0  ;;  %v2116_v44 = vadd.f32 %v2046_v43, %v1862_v1  ;;  %v2303_v31 = vpop.f32.mrf.mxu0  ;;  %v1964_v62 = vpack.c.bf16 %v3202_v26, %v3201_v54  ;;  %v2218_v1 = vpack.c.bf16 %v3251_v6, %v3250_v60 }
 0x21e   : > { %v2501_v27 = vpack.c.bf16 %v2469_v29, %v2469_v29  ;;  %v2370_v33 = vadd.f32 %v2300_v46, %v2116_v44  ;;  %3171 = vmatmul.msk.bf16.gmra.mxu2 %vm332_vm2, %v1709_v19  ;;  %3220 = vmatmul.msk.bf16.gmra.mxu3 %vm332_vm2, %v1963_v23  ;;  %v3103_v46 = vld [vmem:[%s3489_s11 + $0x43a] ss:$2 sm:$0xff] }
 0x21f   : > { %3269 = vmatmul.msk.bf16.gmra.mxu0 %vm332_vm2, %v2217_v22  ;;  %v1456_v18 = vpack.c.bf16 %v3104_v53, %v3103_v46 }
 0x220   : > { %2534 = vst.msk [vmem:[%s4038_s6 + $0x18] sm:$0xf] %vm2527_vm3, %v2501_v27  ;;  %v2406_v47 = vadd.f32 %v4019_v48, %v2370_v33  ;;  %v1543_v24 = vpop.f32.mrf.mxu1 }
 0x221   : > { %v1795_v34 = vpop.f32.mrf.mxu2  ;;  %v2049_v57 = vpop.f32.mrf.mxu3  ;;  %v1610_v0 = vadd.f32 %v1543_v24, %v3814_v5 }
 0x222   : > { %v2438_v11 = vmax.f32 %v2406_v47, 0.0  ;;  %v1863_v39 = vadd.f32 %v1795_v34, %v1609_v3 }
 0x224   : > { %v2470_v8 = vmin.f32 %v2438_v11, 6.0  ;;  %v2117_v41 = vadd.f32 %v2049_v57, %v1863_v39  ;;  %v2305_v58 = vpop.f32.mrf.mxu0 }
 0x226   : > { %v2502_v50 = vpack.c.bf16 %v2470_v8, %v2470_v8  ;;  %v2371_v4 = vadd.f32 %v2303_v31, %v2117_v41  ;;  %v3105_v8 = vld [vmem:[%s3489_s11 + $0x48a] ss:$2 sm:$0xff]  ;;  %v3106_v41 = vld [vmem:[%s3489_s11 + $0x49a] ss:$2 sm:$0xff] }
 0x228   : > { %2535 = vst.msk [vmem:[%s4038_s6 + $0x1c] sm:$0xf] %vm2527_vm3, %v2502_v50  ;;  %v2407_v59 = vadd.f32 %v4019_v48, %v2371_v4  ;;  %v1546_v43 = vpop.f32.mrf.mxu1  ;;  %v3155_v50 = vld [vmem:[%s3489_s11 + $0x4c0] ss:$2 sm:$0xff]  ;;  %v3203_v4 = vld [vmem:[%s3489_s11 + $0x4b1] ss:$2 sm:$0xff] }
 0x229   : > { %v1797_v2 = vpop.f32.mrf.mxu2  ;;  %v2051_v30 = vpop.f32.mrf.mxu3  ;;  %v1611_v44 = vadd.f32 %v1546_v43, %v3821_v52  ;;  %v3204_v52 = vld [vmem:[%s3489_s11 + $0x4c1] ss:$2 sm:$0xff] }
 0x22a   : > { %v2439_v9 = vmax.f32 %v2407_v59, 0.0  ;;  %v1864_v42 = vadd.f32 %v1797_v2, %v1610_v0  ;;  %v1457_v59 = vpack.c.bf16 %v3106_v41, %v3105_v8  ;;  %v3254_v8 = vld [vmem:[%s3489_s11 + $0x502] ss:$2 sm:$0xff]  ;;  %v3255_v41 = vld [vmem:[%s3489_s11 + $0x512] ss:$2 sm:$0xff] }
 0x22b   : > { %3123 = vmatmul.msk.bf16.gmra.mxu1 %vm332_vm2, %v1456_v18  ;;  %v2219_v18 = vpack.c.bf16 %v3253_v51, %v3252_v38 }
 0x22c   : > { %v2471_v14 = vmin.f32 %v2439_v9, 6.0  ;;  %v2118_v19 = vadd.f32 %v2051_v30, %v1864_v42  ;;  %v2308_v23 = vpop.f32.mrf.mxu0  ;;  %v1965_v30 = vpack.c.bf16 %v3204_v52, %v3203_v4 }
 0x22e   : > { %v2503_v22 = vpack.c.bf16 %v2471_v14, %v2471_v14  ;;  %v2372_v29 = vadd.f32 %v2305_v58, %v2118_v19  ;;  %3172 = vmatmul.msk.bf16.gmra.mxu2 %vm332_vm2, %v1710_v12  ;;  %3221 = vmatmul.msk.bf16.gmra.mxu3 %vm332_vm2, %v1964_v62  ;;  %v3154_v58 = vld [vmem:[%s3489_s11 + $0x4b0] ss:$2 sm:$0xff] }
 0x22f   : > { %3270 = vmatmul.msk.bf16.gmra.mxu0 %vm332_vm2, %v2218_v1  ;;  %v1711_v2 = vpack.c.bf16 %v3155_v50, %v3154_v58 }
 0x230   : > { %2536 = vst.msk [vmem:[%s4038_s6 + $0x20] sm:$0xf] %vm2527_vm3, %v2503_v22  ;;  %v2408_v5 = vadd.f32 %v4019_v48, %v2372_v29  ;;  %v1548_v3 = vpop.f32.mrf.mxu1 }
 0x231   : > { %v1800_v31 = vpop.f32.mrf.mxu2  ;;  %v2054_v27 = vpop.f32.mrf.mxu3  ;;  %v1612_v53 = vadd.f32 %v1548_v3, %v3832_v25  ;;  %v3108_v3 = vld [vmem:[%s3489_s11 + $0x4ea] ss:$2 sm:$0xff] }
 0x232   : > { %v2440_v33 = vmax.f32 %v2408_v5, 0.0  ;;  %v1865_v47 = vadd.f32 %v1800_v31, %v1611_v44 }
 0x234   : > { %v2472_v34 = vmin.f32 %v2440_v33, 6.0  ;;  %v2119_v57 = vadd.f32 %v2054_v27, %v1865_v47  ;;  %v2310_v11 = vpop.f32.mrf.mxu0  ;;  %v3107_v47 = vld [vmem:[%s3489_s11 + $0x4da] ss:$2 sm:$0xff] }
 0x235   : > { %v1458_v4 = vpack.c.bf16 %v3108_v3, %v3107_v47 }
 0x236   : > { %v2504_v39 = vpack.c.bf16 %v2472_v34, %v2472_v34  ;;  %v2373_v24 = vadd.f32 %v2308_v23, %v2119_v57  ;;  %v3156_v34 = vld [vmem:[%s3489_s11 + $0x500] ss:$2 sm:$0xff]  ;;  %v3157_v57 = vld [vmem:[%s3489_s11 + $0x510] ss:$2 sm:$0xff] }
 0x237   : > { %v1712_v38 = vpack.c.bf16 %v3157_v57, %v3156_v34 }
 0x238   : > { %2537 = vst.msk [vmem:[%s4038_s6 + $0x24] sm:$0xf] %vm2527_vm3, %v2504_v39  ;;  %v2409_v46 = vadd.f32 %v4019_v48, %v2373_v24  ;;  %v1551_v6 = vpop.f32.mrf.mxu1 }
 0x239   : > { %v1802_v54 = vpop.f32.mrf.mxu2  ;;  %v2056_v26 = vpop.f32.mrf.mxu3  ;;  %v1613_v1 = vadd.f32 %v1551_v6, %v3839_v40  ;;  %v3206_v40 = vld [vmem:[%s3489_s11 + $0x511] ss:$2 sm:$0xff] }
 0x23a   : > { %v2441_v0 = vmax.f32 %v2409_v46, 0.0  ;;  %v1866_v60 = vadd.f32 %v1802_v54, %v1612_v53  ;;  %v2220_v54 = vpack.c.bf16 %v3255_v41, %v3254_v8 }
 0x23b   : > { %3124 = vmatmul.msk.bf16.gmra.mxu1 %vm332_vm2, %v1457_v59 }
 0x23c   : > { %v2473_v9 = vmin.f32 %v2441_v0, 6.0  ;;  %v2120_v42 = vadd.f32 %v2056_v26, %v1866_v60  ;;  %v2313_v43 = vpop.f32.mrf.mxu0 }
 0x23e   : > { %v2505_v12 = vpack.c.bf16 %v2473_v9, %v2473_v9  ;;  %v2374_v62 = vadd.f32 %v2310_v11, %v2120_v42  ;;  %3173 = vmatmul.msk.bf16.gmra.mxu2 %vm332_vm2, %v1711_v2  ;;  %3222 = vmatmul.msk.bf16.gmra.mxu3 %vm332_vm2, %v1965_v30  ;;  %v3205_v11 = vld [vmem:[%s3489_s11 + $0x501] ss:$2 sm:$0xff] }
 0x23f   : > { %3271 = vmatmul.msk.bf16.gmra.mxu0 %vm332_vm2, %v2219_v18  ;;  %v1966_v51 = vpack.c.bf16 %v3206_v40, %v3205_v11 }
 0x240   : > { %2538 = vst.msk [vmem:[%s4038_s6 + $0x28] sm:$0xf] %vm2527_vm3, %v2505_v12  ;;  %v2410_v25 = vadd.f32 %v4019_v48, %v2374_v62  ;;  %v1553_v29 = vpop.f32.mrf.mxu1 }
 0x241   : > { %v1805_v14 = vpop.f32.mrf.mxu2  ;;  %v2059_v19 = vpop.f32.mrf.mxu3  ;;  %v1614_v24 = vadd.f32 %v1553_v29, %v3850_v45 }
 0x242   : > { %v2442_v23 = vmax.f32 %v2410_v25, 0.0  ;;  %v1867_v22 = vadd.f32 %v1805_v14, %v1613_v1 }
 0x244   : > { %v2474_v5 = vmin.f32 %v2442_v23, 6.0  ;;  %v2121_v44 = vadd.f32 %v2059_v19, %v1867_v22  ;;  %v2315_v31 = vpop.f32.mrf.mxu0 }
 0x246   : > { %v2506_v27 = vpack.c.bf16 %v2474_v5, %v2474_v5  ;;  %v2375_v33 = vadd.f32 %v2313_v43, %v2121_v44 }
 0x248   : > { %2539 = vst.msk [vmem:[%s4038_s6 + $0x2c] sm:$0xf] %vm2527_vm3, %v2506_v27  ;;  %v2411_v39 = vadd.f32 %v4019_v48, %v2375_v33  ;;  %v1556_v53 = vpop.f32.mrf.mxu1 }
 0x249   : > { %v1807_v58 = vpop.f32.mrf.mxu2  ;;  %v2061_v50 = vpop.f32.mrf.mxu3  ;;  %v1615_v2 = vadd.f32 %v1556_v53, %v3857_v32 }
 0x24a   : > { %v2443_v52 = vmax.f32 %v2411_v39, 0.0  ;;  %v1868_v46 = vadd.f32 %v1807_v58, %v1614_v24 }
 0x24b   : > { %3125 = vmatmul.msk.bf16.gmra.mxu1 %vm332_vm2, %v1458_v4 }
 0x24c   : > { %v2475_v26 = vmin.f32 %v2443_v52, 6.0  ;;  %v2122_v59 = vadd.f32 %v2061_v50, %v1868_v46  ;;  %v2318_v0 = vpop.f32.mrf.mxu0 }
 0x24e   : > { %v2507_v60 = vpack.c.bf16 %v2475_v26, %v2475_v26  ;;  %v2376_v6 = vadd.f32 %v2315_v31, %v2122_v59  ;;  %3174 = vmatmul.msk.bf16.gmra.mxu2 %vm332_vm2, %v1712_v38  ;;  %3223 = vmatmul.msk.bf16.gmra.mxu3 %vm332_vm2, %v1966_v51 }
 0x24f   : > { %3272 = vmatmul.msk.bf16.gmra.mxu0 %vm332_vm2, %v2220_v54 }
 0x250   : > { %2540 = vst.msk [vmem:[%s4038_s6 + $0x30] sm:$0xf] %vm2527_vm3, %v2507_v60  ;;  %v2412_v45 = vadd.f32 %v4019_v48, %v2376_v6  ;;  %v1558_v43 = vpop.f32.mrf.mxu1 }
 0x251   : > { %v1810_v30 = vpop.f32.mrf.mxu2  ;;  %v2064_v18 = vpop.f32.mrf.mxu3  ;;  %v1616_v23 = vadd.f32 %v1558_v43, %v3868_v7 }
 0x252   : > { %v2444_v9 = vmax.f32 %v2412_v45, 0.0  ;;  %v1869_v42 = vadd.f32 %v1810_v30, %v1615_v2 }
 0x254   : > { %v2476_v12 = vmin.f32 %v2444_v9, 6.0  ;;  %v2123_v62 = vadd.f32 %v2064_v18, %v1869_v42  ;;  %v2320_v25 = vpop.f32.mrf.mxu0 }
 0x256   : > { %v2508_v1 = vpack.c.bf16 %v2476_v12, %v2476_v12  ;;  %v2377_v14 = vadd.f32 %v2318_v0, %v2123_v62 }
 0x258   : > { %2541 = vst.msk [vmem:[%s4038_s6 + $0x34] sm:$0xf] %vm2527_vm3, %v2508_v1  ;;  %v2413_v19 = vadd.f32 %v4019_v48, %v2377_v14  ;;  %v1561_v44 = vpop.f32.mrf.mxu1 }
 0x259   : > { %v1812_v22 = vpop.f32.mrf.mxu2  ;;  %v2066_v29 = vpop.f32.mrf.mxu3  ;;  %v1617_v57 = vadd.f32 %v1561_v44, %v3875_v17 }
 0x25a   : > { %v2445_v32 = vmax.f32 %v2413_v19, 0.0  ;;  %v1870_v5 = vadd.f32 %v1812_v22, %v1616_v23 }
 0x25c   : > { %v2477_v31 = vmin.f32 %v2445_v32, 6.0  ;;  %v2124_v27 = vadd.f32 %v2066_v29, %v1870_v5  ;;  %v2323_v33 = vpop.f32.mrf.mxu0 }
 0x25e   : > { %v2509_v47 = vpack.c.bf16 %v2477_v31, %v2477_v31  ;;  %v2378_v3 = vadd.f32 %v2320_v25, %v2124_v27 }
 0x260   : > { %2542 = vst.msk [vmem:[%s4038_s6 + $0x38] sm:$0xf] %vm2527_vm3, %v2509_v47  ;;  %v2414_v34 = vadd.f32 %v4019_v48, %v2378_v3  ;;  %v1563_v24 = vpop.f32.mrf.mxu1 }
 0x261   : > { %v1815_v11 = vpop.f32.mrf.mxu2  ;;  %v2069_v40 = vpop.f32.mrf.mxu3  ;;  %v1618_v46 = vadd.f32 %v1563_v24, %v3886_v15 }
 0x262   : > { %v2446_v7 = vmax.f32 %v2414_v34, 0.0  ;;  %v1871_v39 = vadd.f32 %v1815_v11, %v1617_v57 }
 0x264   : > { %v2478_v8 = vmin.f32 %v2446_v7, 6.0  ;;  %v2125_v41 = vadd.f32 %v2069_v40, %v1871_v39  ;;  %v2325_v58 = vpop.f32.mrf.mxu0 }
 0x266   : > { %v2510_v50 = vpack.c.bf16 %v2478_v8, %v2478_v8  ;;  %v2379_v4 = vadd.f32 %v2323_v33, %v2125_v41 }
 0x268   : > { %2543 = vst.msk [vmem:[%s4038_s6 + $0x3c] sm:$0xf] %vm2527_vm3, %v2510_v50  ;;  %v2415_v52 = vadd.f32 %v4019_v48, %v2379_v4  ;;  %v1566_v54 = vpop.f32.mrf.mxu1 }
 0x269   : > { %v1817_v53 = vpop.f32.mrf.mxu2  ;;  %v2071_v38 = vpop.f32.mrf.mxu3  ;;  %v1619_v2 = vadd.f32 %v1566_v54, %v3893_v10 }
 0x26a   : > { %v2447_v17 = vmax.f32 %v2415_v52, 0.0  ;;  %v1872_v51 = vadd.f32 %v1817_v53, %v1618_v46 }
 0x26c   : > { %v2479_v26 = vmin.f32 %v2447_v17, 6.0  ;;  %v2126_v59 = vadd.f32 %v2071_v38, %v1872_v51  ;;  %v2328_v0 = vpop.f32.mrf.mxu0 }
 0x26e   : > { %v2511_v60 = vpack.c.bf16 %v2479_v26, %v2479_v26  ;;  %v2380_v6 = vadd.f32 %v2325_v58, %v2126_v59 }
 0x270   : > { %2544 = vst.msk [vmem:[%s4038_s6 + $0x40] sm:$0xf] %vm2527_vm3, %v2511_v60  ;;  %v2416_v45 = vadd.f32 %v4019_v48, %v2380_v6  ;;  %v1568_v42 = vpop.f32.mrf.mxu1 }
 0x271   : > { %v1820_v30 = vpop.f32.mrf.mxu2  ;;  %v2074_v18 = vpop.f32.mrf.mxu3  ;;  %v1620_v19 = vadd.f32 %v1568_v42, %v3904_v35 }
 0x272   : > { %v2448_v15 = vmax.f32 %v2416_v45, 0.0  ;;  %v1873_v9 = vadd.f32 %v1820_v30, %v1619_v2 }
 0x274   : > { %v2480_v43 = vmin.f32 %v2448_v15, 6.0  ;;  %v2127_v12 = vadd.f32 %v2074_v18, %v1873_v9  ;;  %v2330_v62 = vpop.f32.mrf.mxu0 }
 0x276   : > { %v2512_v25 = vpack.c.bf16 %v2480_v43, %v2480_v43  ;;  %v2381_v1 = vadd.f32 %v2328_v0, %v2127_v12 }
 0x278   : > { %2545 = vst.msk [vmem:[%s4038_s6 + $0x44] sm:$0xf] %vm2527_vm3, %v2512_v25  ;;  %v2417_v14 = vadd.f32 %v4019_v48, %v2381_v1  ;;  %v1571_v32 = vpop.f32.mrf.mxu1 }
 0x279   : > { %v1822_v23 = vpop.f32.mrf.mxu2  ;;  %v2076_v22 = vpop.f32.mrf.mxu3  ;;  %v1621_v3 = vadd.f32 %v1571_v32, %v3911_v63 }
 0x27a   : > { %v2449_v10 = vmax.f32 %v2417_v14, 0.0  ;;  %v1874_v29 = vadd.f32 %v1822_v23, %v1620_v19 }
 0x27c   : > { %v2481_v5 = vmin.f32 %v2449_v10, 6.0  ;;  %v2128_v44 = vadd.f32 %v2076_v22, %v1874_v29  ;;  %v2333_v31 = vpop.f32.mrf.mxu0 }
 0x27e   : > { %v2513_v27 = vpack.c.bf16 %v2481_v5, %v2481_v5  ;;  %v2382_v33 = vadd.f32 %v2330_v62, %v2128_v44 }
 0x280   : > { %2546 = vst.msk [vmem:[%s4038_s6 + $0x48] sm:$0xf] %vm2527_vm3, %v2513_v27  ;;  %v2418_v47 = vadd.f32 %v4019_v48, %v2382_v33  ;;  %v1573_v40 = vpop.f32.mrf.mxu1 }
 0x281   : > { %v1825_v34 = vpop.f32.mrf.mxu2  ;;  %v2079_v57 = vpop.f32.mrf.mxu3  ;;  %v1622_v50 = vadd.f32 %v1573_v40, %v3922_v55 }
 0x282   : > { %v2450_v35 = vmax.f32 %v2418_v47, 0.0  ;;  %v1875_v11 = vadd.f32 %v1825_v34, %v1621_v3 }
 0x284   : > { %v2482_v7 = vmin.f32 %v2450_v35, 6.0  ;;  %v2129_v39 = vadd.f32 %v2079_v57, %v1875_v11  ;;  %v2335_v24 = vpop.f32.mrf.mxu0 }
 0x286   : > { %v2514_v8 = vpack.c.bf16 %v2482_v7, %v2482_v7  ;;  %v2383_v41 = vadd.f32 %v2333_v31, %v2129_v39 }
 0x288   : > { %2547 = vst.msk [vmem:[%s4038_s6 + $0x4c] sm:$0xf] %vm2527_vm3, %v2514_v8  ;;  %v2419_v58 = vadd.f32 %v4019_v48, %v2383_v41  ;;  %v1576_v53 = vpop.f32.mrf.mxu1 }
 0x289   : > { %v1827_v4 = vpop.f32.mrf.mxu2  ;;  %v2081_v52 = vpop.f32.mrf.mxu3  ;;  %v1623_v0 = vadd.f32 %v1576_v53, %v3929_v49 }
 0x28a   : > { %v2451_v63 = vmax.f32 %v2419_v58, 0.0  ;;  %v1876_v46 = vadd.f32 %v1827_v4, %v1622_v50 }
 0x28c   : > { %v2483_v38 = vmin.f32 %v2451_v63, 6.0  ;;  %v2130_v17 = vadd.f32 %v2081_v52, %v1876_v46  ;;  %v2338_v51 = vpop.f32.mrf.mxu0 }
 0x28e   : > { %v2515_v54 = vpack.c.bf16 %v2483_v38, %v2483_v38  ;;  %v2384_v26 = vadd.f32 %v2335_v24, %v2130_v17 }
 0x290   : > { %2548 = vst.msk [vmem:[%s4038_s6 + $0x50] sm:$0xf] %vm2527_vm3, %v2515_v54  ;;  %v2420_v59 = vadd.f32 %v4019_v48, %v2384_v26  ;;  %v1578_v2 = vpop.f32.mrf.mxu1 }
 0x291   : > { %v1830_v60 = vpop.f32.mrf.mxu2  ;;  %v2084_v6 = vpop.f32.mrf.mxu3  ;;  %v1624_v12 = vadd.f32 %v1578_v2, %v3940_v20 }
 0x292   : > { %v2452_v55 = vmax.f32 %v2420_v59, 0.0  ;;  %v1877_v45 = vadd.f32 %v1830_v60, %v1623_v0 }
 0x294   : > { %v2484_v30 = vmin.f32 %v2452_v55, 6.0  ;;  %v2131_v18 = vadd.f32 %v2084_v6, %v1877_v45  ;;  %v2340_v15 = vpop.f32.mrf.mxu0 }
 0x296   : > { %v2516_v9 = vpack.c.bf16 %v2484_v30, %v2484_v30  ;;  %v2385_v42 = vadd.f32 %v2338_v51, %v2131_v18 }
 0x298   : > { %2549 = vst.msk [vmem:[%s4038_s6 + $0x54] sm:$0xf] %vm2527_vm3, %v2516_v9  ;;  %v2421_v43 = vadd.f32 %v4019_v48, %v2385_v42  ;;  %v1581_v14 = vpop.f32.mrf.mxu1 }
 0x299   : > { %v1832_v62 = vpop.f32.mrf.mxu2  ;;  %v2086_v25 = vpop.f32.mrf.mxu3  ;;  %v1625_v5 = vadd.f32 %v1581_v14, %v3947_v37 }
 0x29a   : > { %v2453_v49 = vmax.f32 %v2421_v43, 0.0  ;;  %v1878_v1 = vadd.f32 %v1832_v62, %v1624_v12 }
 0x29c   : > { %v2485_v19 = vmin.f32 %v2453_v49, 6.0  ;;  %v2132_v23 = vadd.f32 %v2086_v25, %v1878_v1  ;;  %v2343_v22 = vpop.f32.mrf.mxu0 }
 0x29e   : > { %v2517_v10 = vpack.c.bf16 %v2485_v19, %v2485_v19  ;;  %v2386_v29 = vadd.f32 %v2340_v15, %v2132_v23 }
 0x2a0   : > { %2550 = vst.msk [vmem:[%s4038_s6 + $0x58] sm:$0xf] %vm2527_vm3, %v2517_v10  ;;  %v2422_v32 = vadd.f32 %v4019_v48, %v2386_v29  ;;  %v1583_v33 = vpop.f32.mrf.mxu1 }
 0x2a1   : > { %v1835_v44 = vpop.f32.mrf.mxu2  ;;  %v2089_v31 = vpop.f32.mrf.mxu3  ;;  %v1626_v40 = vadd.f32 %v1583_v33, %v3958_v16 }
 0x2a2   : > { %v2454_v20 = vmax.f32 %v2422_v32, 0.0  ;;  %v1879_v27 = vadd.f32 %v1835_v44, %v1625_v5 }
 0x2a4   : > { %v2486_v47 = vmin.f32 %v2454_v20, 6.0  ;;  %v2133_v3 = vadd.f32 %v2089_v31, %v1879_v27  ;;  %v2345_v34 = vpop.f32.mrf.mxu0 }
 0x2a6   : > { %v2518_v57 = vpack.c.bf16 %v2486_v47, %v2486_v47  ;;  %v2387_v35 = vadd.f32 %v2343_v22, %v2133_v3 }
 0x2a8   : > { %2551 = vst.msk [vmem:[%s4038_s6 + $0x5c] sm:$0xf] %vm2527_vm3, %v2518_v57  ;;  %v2423_v11 = vadd.f32 %v4019_v48, %v2387_v35  ;;  %v1586_v8 = vpop.f32.mrf.mxu1 }
 0x2a9   : > { %v1837_v7 = vpop.f32.mrf.mxu2  ;;  %v2091_v39 = vpop.f32.mrf.mxu3  ;;  %v1627_v46 = vadd.f32 %v1586_v8, %v3965_v28 }
 0x2aa   : > { %v2455_v37 = vmax.f32 %v2423_v11, 0.0  ;;  %v1880_v24 = vadd.f32 %v1837_v7, %v1626_v40 }
 0x2ac   : > { %v2487_v41 = vmin.f32 %v2455_v37, 6.0  ;;  %v2134_v58 = vadd.f32 %v2091_v39, %v1880_v24  ;;  %v2348_v50 = vpop.f32.mrf.mxu0 }
 0x2ae   : > { %v2519_v4 = vpack.c.bf16 %v2487_v41, %v2487_v41  ;;  %v2388_v52 = vadd.f32 %v2345_v34, %v2134_v58 }
 0x2b0   : > { %2552 = vst.msk [vmem:[%s4038_s6 + $0x60] sm:$0xf] %vm2527_vm3, %v2519_v4  ;;  %v2424_v63 = vadd.f32 %v4019_v48, %v2388_v52  ;;  %v1588_v51 = vpop.f32.mrf.mxu1 }
 0x2b1   : > { %v1840_v53 = vpop.f32.mrf.mxu2  ;;  %v2094_v38 = vpop.f32.mrf.mxu3  ;;  %v1628_v55 = vadd.f32 %v1588_v51, %v3976_v36 }
 0x2b2   : > { %v2456_v16 = vmax.f32 %v2424_v63, 0.0  ;;  %v1881_v17 = vadd.f32 %v1840_v53, %v1627_v46 }
 0x2b4   : > { %v2488_v54 = vmin.f32 %v2456_v16, 6.0  ;;  %v2135_v26 = vadd.f32 %v2094_v38, %v1881_v17  ;;  %v2350_v59 = vpop.f32.mrf.mxu0 }
 0x2b6   : > { %v2520_v0 = vpack.c.bf16 %v2488_v54, %v2488_v54  ;;  %v2389_v60 = vadd.f32 %v2348_v50, %v2135_v26 }
 0x2b8   : > { %2553 = vst.msk [vmem:[%s4038_s6 + $0x64] sm:$0xf] %vm2527_vm3, %v2520_v0  ;;  %v2425_v6 = vadd.f32 %v4019_v48, %v2389_v60  ;;  %v1591_v18 = vpop.f32.mrf.mxu1 }
 0x2b9   : > { %v1842_v45 = vpop.f32.mrf.mxu2  ;;  %v2096_v2 = vpop.f32.mrf.mxu3  ;;  %v1629_v25 = vadd.f32 %v1591_v18, %v3983_v13 }
 0x2ba   : > { %v2457_v28 = vmax.f32 %v2425_v6, 0.0  ;;  %v1882_v30 = vadd.f32 %v1842_v45, %v1628_v55 }
 0x2bc   : > { %v2489_v15 = vmin.f32 %v2457_v28, 6.0  ;;  %v2136_v9 = vadd.f32 %v2096_v2, %v1882_v30  ;;  %v2353_v12 = vpop.f32.mrf.mxu0 }
 0x2be   : > { %v2521_v42 = vpack.c.bf16 %v2489_v15, %v2489_v15  ;;  %v2390_v43 = vadd.f32 %v2350_v59, %v2136_v9 }
 0x2c0   : > { %2554 = vst.msk [vmem:[%s4038_s6 + $0x68] sm:$0xf] %vm2527_vm3, %v2521_v42  ;;  %v2426_v62 = vadd.f32 %v4019_v48, %v2390_v43  ;;  %v1593_v19 = vpop.f32.mrf.mxu1 }
 0x2c1   : > { %v1845_v49 = vpop.f32.mrf.mxu2  ;;  %v2099_v1 = vpop.f32.mrf.mxu3  ;;  %v1630_v5 = vadd.f32 %v1593_v19, %v3994_v56 }
 0x2c2   : > { %v2458_v36 = vmax.f32 %v2426_v62, 0.0  ;;  %v1883_v14 = vadd.f32 %v1845_v49, %v1629_v25 }
 0x2c4   : > { %v2490_v23 = vmin.f32 %v2458_v36, 6.0  ;;  %v2137_v22 = vadd.f32 %v2099_v1, %v1883_v14  ;;  %v2355_v44 = vpop.f32.mrf.mxu0 }
 0x2c6   : > { %v2522_v10 = vpack.c.bf16 %v2490_v23, %v2490_v23  ;;  %v2391_v29 = vadd.f32 %v2353_v12, %v2137_v22 }
 0x2c8   : > { %2555 = vst.msk [vmem:[%s4038_s6 + $0x6c] sm:$0xf] %vm2527_vm3, %v2522_v10  ;;  %v2427_v32 = vadd.f32 %v4019_v48, %v2391_v29  ;;  %v1596_v33 = vpop.f32.mrf.mxu1 }
 0x2c9   : > { %v1847_v31 = vpop.f32.mrf.mxu2  ;;  %v2101_v20 = vpop.f32.mrf.mxu3  ;;  %v1631_v11 = vadd.f32 %v1596_v33, %v4001_v61 }
 0x2ca   : > { %v2459_v13 = vmax.f32 %v2427_v32, 0.0  ;;  %v1884_v27 = vadd.f32 %v1847_v31, %v1630_v5 }
 0x2cc   : > { %v2491_v47 = vmin.f32 %v2459_v13, 6.0  ;;  %v2138_v3 = vadd.f32 %v2101_v20, %v1884_v27  ;;  %v2358_v37 = vpop.f32.mrf.mxu0 }
 0x2ce   : > { %v2523_v34 = vpack.c.bf16 %v2491_v47, %v2491_v47  ;;  %v2392_v57 = vadd.f32 %v2355_v44, %v2138_v3 }
 0x2d0   : > { %2556 = vst.msk [vmem:[%s4038_s6 + $0x70] sm:$0xf] %vm2527_vm3, %v2523_v34  ;;  %v2428_v35 = vadd.f32 %v4019_v48, %v2392_v57  ;;  %v1598_v41 = vpop.f32.mrf.mxu1 }
 0x2d1   : > { %v1850_v40 = vpop.f32.mrf.mxu2  ;;  %v2104_v7 = vpop.f32.mrf.mxu3  ;;  %v1632_v52 = vadd.f32 %v1598_v41, %v4012_v21  ;;  %v3326_v21 = vld [vmem:[%s4275_s2] ss:$0 sm:$0xff] }
 0x2d2   : > { %v2460_v56 = vmax.f32 %v2428_v35, 0.0  ;;  %v1885_v39 = vadd.f32 %v1850_v40, %v1631_v11 }
 0x2d4   : > { %v2492_v24 = vmin.f32 %v2460_v56, 6.0  ;;  %v2139_v8 = vadd.f32 %v2104_v7, %v1885_v39  ;;  %v2360_v17 = vpop.f32.mrf.mxu0 }
 0x2d6   : > { %v2524_v58 = vpack.c.bf16 %v2492_v24, %v2492_v24  ;;  %v2393_v50 = vadd.f32 %v2358_v37, %v2139_v8 }
 0x2d8   : > { %2557 = vst.msk [vmem:[%s4038_s6 + $0x74] sm:$0xf] %vm2527_vm3, %v2524_v58  ;;  %v2429_v4 = vadd.f32 %v4019_v48, %v2393_v50 }
 0x2d9   : > { %v1852_v61 = vpop.f32.mrf.mxu2  ;;  %v2106_v53 = vpop.f32.mrf.mxu3 }
 0x2da   : > { %v2461_v63 = vmax.f32 %v2429_v4, 0.0  ;;  %v1886_v46 = vadd.f32 %v1852_v61, %v1632_v52 }
 0x2dc   : > { %v2493_v38 = vmin.f32 %v2461_v63, 6.0  ;;  %v2140_v16 = vadd.f32 %v2106_v53, %v1886_v46 }
 0x2de   : > { %v2525_v51 = vpack.c.bf16 %v2493_v38, %v2493_v38  ;;  %v2394_v54 = vadd.f32 %v2360_v17, %v2140_v16 }
 0x2e0   : > { %2558 = vst.msk [vmem:[%s4038_s6 + $0x78] sm:$0xf] %vm2527_vm3, %v2525_v51  ;;  %v2430_v48 = vadd.f32 %v3326_v21, %v2394_v54 }
 0x2e2   : > { %v2462_v26 = vmax.f32 %v2430_v48, 0.0 }
 0x2e4   : > { %v2494_v59 = vmin.f32 %v2462_v26, 6.0 }
 0x2e6   : > { %v2526_v0 = vpack.c.bf16 %v2494_v59, %v2494_v59 }
 0x2e8   : > { %2559 = vst.msk [vmem:[%s4038_s6 + $0x7c] sm:$0xf] %vm2527_vm3, %v2526_v0 }
 0x2e9   : > { %3354 = shalt.err (!%p3351_p3)
}
 0x2ea   : > { %s3392_s4 = smov 64   ;;  %s3393_s5 = smov 4  }
 0x2eb   : > { %3283 = dma.vmem_to_hbm [thread:$0]  (%p3452_p5), %s2574_s19, 2048, %s2576_s20, %s2561_s16, %s3392_s4, %s3392_s4, %s3393_s5  }
 0x2ec PF: > { %p3289_p4 = scmp.ge.s32.totalorder %s3389_s15, 2  ;;  %s2590_s6 = sand.u32 1, %s3377_s12  }
 0x2ed   : > { %s2591_s7 = scalar_lea.sflag [#allocation3], %s2590_s6 }
 0x2ee   : > { %p3286_p7 = pnand %p3289_p4, %p3456_p6 }
 0x2f0   : > { %p3287_p8 = pneg %p3286_p7 }
 0x2f2   : > { %3372 = dma.done.wait (%p3287_p8), %s2591_s7, 2048  }
 0x2f3   : > { %3374 = vsyncadd (%p3287_p8), %s2591_s7, 4294965248  ;;  %p13_p9 = scmp.ge.s32.totalorder %s3439_s18, 4   ;;  %s4279_s12 = smov %s3381_s13 }
 0x2f4   : > { %s4280_s13 = smov %s3385_s14  ;;  %s4281_s14 = smov %s3450_s21 }
 0x2f5   : > { %s4282_s15 = smov %s3439_s18  ;;  %15 = sbr.rel (!%p13_p9) target bundleno = 3 (0x3), region = 362 }
 0x2fa   :  { %2597 = vsyncpa [#allocation3], 1 }
 0x2fb   :  { %2599 = vsyncpa [#allocation3 + $0x1], 1 }

</bundles_post_ra>
